<compile_context>
chip_gen: v7x
topology: tpu7x:2x2x1
jax: 0.10.0
libtpu: 0.0.40
codegen_flags: <defaults>
</compile_context>

<pallas_src>
import math
from functools import partial

import jax
import jax.numpy as jnp
from jax.experimental import pallas as pl
from jax.experimental.pallas import tpu as pltpu

BN_EPS = 1e-5
LANE = 128
STATS_LANES = 128

# Per-step working-set budget used to size the tile (whole images per grid
# step).  8 MiB fits inside every generation's *default* scoped VMEM with
# double-buffering headroom (v5e default 16 MiB, v6e/v7x 32 MiB); raise it
# together with _VMEM_LIMIT_BYTES when tuning a specific chip.
_VMEM_WORK_BUDGET_BYTES = 8 * 1024 * 1024
_VMEM_LIMIT_BYTES = 32 * 1024 * 1024      # <= scoped/physical limit on v5e/v6e/v7x


def _round_up(x, m):
    return -(-x // m) * m


# --------------------------------------------------------------------------- #
# In-kernel conv: sum of KH*KW shifted [Cout,Cin] x [Cin,M_wide] matmuls over a
# flattened padded image x_flat[ci, r*Wp + c].  The "wide" output has Wp
# columns per row (m = oh*Wp + ow'); for kernel offset (i,j) the needed input
# elements are exactly the contiguous (stride-s) lane slice starting at
# i*Wp + j, so no im2col is ever materialized.  Columns ow' >= OW are garbage
# and are masked (pass A) or simply never stored (pass B).
# --------------------------------------------------------------------------- #
def _conv_one_image(x_ref, w_ref, img, *, kh, kw, wp, m_wide, stride):
    cout = w_ref.shape[1]
    acc = jnp.zeros((cout, m_wide), jnp.float32)
    for i in range(kh):
        for j in range(kw):
            off = i * wp + j
            sl = pl.ds(off, m_wide) if stride == 1 else pl.ds(off, m_wide, stride)
            xs = x_ref[img, :, sl]                    # [Cin, M_wide] lane-dense
            wk = w_ref[i * kw + j]                    # [Cout, Cin]
            acc = acc + jnp.dot(wk, xs, preferred_element_type=jnp.float32)
    return acc


def _conv_prelu_stats_kernel(x_ref, w_ref, alpha_ref, mask_ref, stats_ref, *,
                             kh, kw, wp, m_wide, stride, tile_n):
    """Pass A: conv + PReLU + per-tile partial BN statistics (no y written).

    x_ref:     [tile_n, Cin, Lpad]     bf16  flattened padded images
    w_ref:     [KH*KW, Cout, Cin]      bf16  conv weight, per-offset slices
    alpha_ref: [Cout, 1]               f32   PReLU per-channel slope
    mask_ref:  [1, M_wide]             f32   1.0 on valid wide columns
    stats_ref: [1, Cout, STATS_LANES]  f32   lane 0 = sum, lane 1 = sum-of-sq
    """
    alpha = alpha_ref[...]
    mask = mask_ref[...]
    cout = stats_ref.shape[1]
    s_tot = jnp.zeros((cout, 1), jnp.float32)
    ss_tot = jnp.zeros((cout, 1), jnp.float32)
    for img in range(tile_n):
        acc = _conv_one_image(x_ref, w_ref, img, kh=kh, kw=kw, wp=wp,
                              m_wide=m_wide, stride=stride)
        y = jnp.where(acc >= 0.0, acc, alpha * acc)      # PReLU
        ym = y * mask                                    # drop garbage columns
        s_tot = s_tot + jnp.sum(ym, axis=1, keepdims=True)
        ss_tot = ss_tot + jnp.sum(ym * y, axis=1, keepdims=True)
    # Lane-padded stats block -> unmasked output DMA per grid step.
    stats_ref[...] = jnp.zeros_like(stats_ref)
    stats_ref[0, :, 0:1] = s_tot
    stats_ref[0, :, 1:2] = ss_tot


def _conv_prelu_bn_kernel(x_ref, w_ref, alpha_ref, affine_ref, o_ref, *,
                          kh, kw, wp, m_wide, stride, tile_n, oh, ow):
    """Pass B: recompute conv + PReLU, apply folded BN affine, write NCHW out.

    affine_ref: [Cout, 2] f32  (col 0 = scale, col 1 = shift)
    o_ref:      [tile_n, Cout, OH, OW] f32  final layout; transpose folded in
    """
    alpha = alpha_ref[...]
    scale = affine_ref[:, 0:1]
    shift = affine_ref[:, 1:2]
    for img in range(tile_n):
        acc = _conv_one_image(x_ref, w_ref, img, kh=kh, kw=kw, wp=wp,
                              m_wide=m_wide, stride=stride)
        y = jnp.where(acc >= 0.0, acc, alpha * acc)
        y = y * scale + shift
        # Scatter the OW valid columns of each wide row into the NCHW block.
        for r in range(oh):
            o_ref[img, :, r, :] = y[:, r * wp:r * wp + ow]


# --------------------------------------------------------------------------- #
# Wrapper
# --------------------------------------------------------------------------- #
def conv_layer_forward(x, weight, prelu_alpha, bn_gamma, bn_beta, *,
                       stride, pad, compute_dtype=jnp.bfloat16):
    """Conv2d(bias=False) -> PReLU -> BatchNorm2d (training-mode, biased var).

    x: [N, Cin, H, W] (NCHW), weight: [Cout, Cin, KH, KW].  Returns NCHW f32.
    """
    n, cin, h, w = x.shape
    cout, _, kh, kw = weight.shape
    hp, wp = h + 2 * pad, w + 2 * pad
    oh = (hp - kh) // stride + 1
    ow = (wp - kw) // stride + 1
    m_wide = oh * wp                       # per-image "wide" output columns
    m_valid = n * oh * ow                  # true BN sample count

    # ---- flattened, padded, lane-friendly input layout ----------------------
    max_off = (kh - 1) * wp + (kw - 1)
    lpad = _round_up(max_off + (m_wide - 1) * stride + 1, LANE)
    xp = jnp.pad(x, ((0, 0), (0, 0), (pad, pad), (pad, pad)))
    xflat = jnp.pad(xp.reshape(n, cin, hp * wp),
                    ((0, 0), (0, 0), (0, lpad - hp * wp))).astype(compute_dtype)
    wk = weight.transpose(2, 3, 0, 1).reshape(kh * kw, cout, cin).astype(compute_dtype)
    alpha = prelu_alpha.reshape(cout, 1).astype(jnp.float32)
    mask = ((jnp.arange(m_wide) % wp) < ow).astype(jnp.float32).reshape(1, m_wide)

    # ---- tile size (whole images per grid step) from a VMEM budget ----------
    bpe = jnp.dtype(compute_dtype).itemsize
    per_image = (2 * cin * lpad * bpe                       # x block, double-buffered
                 + 2 * cout * oh * ow * 4                   # out block, double-buffered
                 + 3 * cout * _round_up(m_wide, LANE) * 4)  # live f32 values
    tile_n = max(1, min(n, _VMEM_WORK_BUDGET_BYTES // int(per_image)))
    if n >= 2:
        # Keep >= 2 grid steps: double-buffered pipelining + megacore (v7x).
        tile_n = min(tile_n, n // 2)
    while n % tile_n:
        tile_n -= 1
    n_tiles = n // tile_n
    assert tile_n * int(per_image) < _VMEM_LIMIT_BYTES, (tile_n, per_image)

    x_spec = pl.BlockSpec((tile_n, cin, lpad), lambda t: (t, 0, 0))
    w_spec = pl.BlockSpec((kh * kw, cout, cin), lambda t: (0, 0, 0))
    alpha_spec = pl.BlockSpec((cout, 1), lambda t: (0, 0))
    mask_spec = pl.BlockSpec((1, m_wide), lambda t: (0, 0))
    stats_spec = pl.BlockSpec((1, cout, STATS_LANES), lambda t: (t, 0, 0))
    affine_spec = pl.BlockSpec((cout, 2), lambda t: (0, 0))
    out_spec = pl.BlockSpec((tile_n, cout, oh, ow), lambda t: (t, 0, 0, 0))

    cparams = pltpu.CompilerParams(dimension_semantics=("parallel",),
                                   vmem_limit_bytes=_VMEM_LIMIT_BYTES)
    conv_flops = 2 * n * m_wide * cin * kh * kw * cout

    # ---- Pass A: conv + PReLU + masked partial BN statistics ----------------
    cost_a = pl.CostEstimate(
        flops=int(conv_flops + 4 * n * m_wide * cout), transcendentals=0,
        bytes_accessed=int(xflat.size * bpe + wk.size * bpe + alpha.size * 4
                           + mask.size * 4 + n_tiles * cout * STATS_LANES * 4))
    stats = pl.pallas_call(
        partial(_conv_prelu_stats_kernel, kh=kh, kw=kw, wp=wp,
                m_wide=m_wide, stride=stride, tile_n=tile_n),
        out_shape=jax.ShapeDtypeStruct((n_tiles, cout, STATS_LANES), jnp.float32),
        grid=(n_tiles,),
        in_specs=[x_spec, w_spec, alpha_spec, mask_spec],
        out_specs=stats_spec,
        compiler_params=cparams,
        cost_estimate=cost_a,
    )(xflat, wk, alpha, mask)

    # ---- Finalize global BN statistics (tiny: n_tiles x Cout) ---------------
    # E[x^2] - E[x]^2 in f32; post-PReLU activations here are ~unit-scale so
    # cancellation is negligible (a shifted-sum/Welford merge would be more
    # robust if |mean| >> std ever holds).  Biased variance == PyTorch forward.
    tot = jnp.sum(stats[:, :, :2], axis=0)                # [Cout, 2]
    mean = tot[:, 0] / m_valid
    var = tot[:, 1] / m_valid - mean * mean
    inv = jax.lax.rsqrt(var + BN_EPS)
    scale = bn_gamma.astype(jnp.float32) * inv
    shift = bn_beta.astype(jnp.float32) - mean * scale
    affine = jnp.stack([scale, shift], axis=1)            # [Cout, 2]

    # ---- Pass B: recompute conv + PReLU, folded BN affine, NCHW write -------
    cost_b = pl.CostEstimate(
        flops=int(conv_flops + 4 * n * m_wide * cout), transcendentals=0,
        bytes_accessed=int(xflat.size * bpe + wk.size * bpe + alpha.size * 4
                           + cout * 2 * 4 + n * cout * oh * ow * 4))
    out = pl.pallas_call(
        partial(_conv_prelu_bn_kernel, kh=kh, kw=kw, wp=wp, m_wide=m_wide,
                stride=stride, tile_n=tile_n, oh=oh, ow=ow),
        out_shape=jax.ShapeDtypeStruct((n, cout, oh, ow), jnp.float32),
        grid=(n_tiles,),
        in_specs=[x_spec, w_spec, alpha_spec, affine_spec],
        out_specs=out_spec,
        compiler_params=cparams,
        cost_estimate=cost_b,
    )(xflat, wk, alpha, affine)

    return out


# --------------------------------------------------------------------------- #
# Pure-JAX reference (Conv2d -> PReLU -> BatchNorm2d, training mode)
# --------------------------------------------------------------------------- #
def _reference_forward(x, weight, prelu_alpha, bn_gamma, bn_beta, *, stride, pad):
    y = jax.lax.conv_general_dilated(
        x, weight, window_strides=(stride, stride),
        padding=[(pad, pad), (pad, pad)],
        dimension_numbers=("NCHW", "OIHW", "NCHW"))
    a = prelu_alpha.reshape(1, -1, 1, 1)
    y = jnp.where(y >= 0, y, a * y)
    mean = jnp.mean(y, axis=(0, 2, 3), keepdims=True)
    var = jnp.mean(jnp.square(y - mean), axis=(0, 2, 3), keepdims=True)
    y = (y - mean) * jax.lax.rsqrt(var + BN_EPS)
    return y * bn_gamma.reshape(1, -1, 1, 1) + bn_beta.reshape(1, -1, 1, 1)


if __name__ == "__main__":
    # ConvLayer(in_chan=4, out_chan=8, kernel_size=3, stride=1, pad=1)
    N, Cin, H, W = 2, 4, 16, 16
    Cout, K, STRIDE, PAD = 8, 3, 1, 1

    key = jax.random.PRNGKey(0)
    kx, kw_ = jax.random.split(key)
    x = jax.random.normal(kx, (N, Cin, H, W), dtype=jnp.float32)

    # Parameter init mirroring ConvLayer.init_weights():
    #  - conv weight: kaiming_normal_(mode='fan_out', nonlinearity='leaky_relu')
    fan_out = Cout * K * K
    w_std = math.sqrt(2.0) / math.sqrt(fan_out)
    weight = w_std * jax.random.normal(kw_, (Cout, Cin, K, K), dtype=jnp.float32)
    #  - PReLU: alpha = 0.25 per channel (torch default)
    prelu_alpha = jnp.full((Cout,), 0.25, dtype=jnp.float32)
    #  - BatchNorm: weight = 1, bias = 0
    bn_gamma = jnp.ones((Cout,), dtype=jnp.float32)
    bn_beta = jnp.zeros((Cout,), dtype=jnp.float32)

    fwd = jax.jit(partial(conv_layer_forward, stride=STRIDE, pad=PAD))
    out = jax.block_until_ready(fwd(x, weight, prelu_alpha, bn_gamma, bn_beta))
    assert out.shape == (N, Cout, H, W), out.shape

    # Primary check: f32 reference fed the same bf16-rounded conv operands the
    # kernel pushes to the MXU (both accumulate in f32).
    x_bf = x.astype(jnp.bfloat16).astype(jnp.float32)
    w_bf = weight.astype(jnp.bfloat16).astype(jnp.float32)
    ref_bf = _reference_forward(x_bf, w_bf, prelu_alpha, bn_gamma, bn_beta,
                                stride=STRIDE, pad=PAD)
    err = float(jnp.max(jnp.abs(out - ref_bf)))
    assert jnp.allclose(out, ref_bf, atol=1e-3, rtol=1e-3), err

    # Secondary sanity check: full-f32 reference (difference = bf16 operand
    # rounding only; loose tolerance).
    ref_f32 = _reference_forward(x, weight, prelu_alpha, bn_gamma, bn_beta,
                                 stride=STRIDE, pad=PAD)
    err32 = float(jnp.max(jnp.abs(out - ref_f32)))
    assert jnp.allclose(out, ref_f32, atol=5e-2, rtol=5e-2), err32

    print("KERNEL_OK")
</pallas_src>

<mosaic_0001>
module attributes {stable_mosaic.version = 11 : i64} {
  func.func @_conv_prelu_stats_kernel(%arg0: i32, %arg1: memref<1x4x384xbf16, #tpu.memory_space<vmem>>, %arg2: memref<9x8x4xbf16, #tpu.memory_space<vmem>>, %arg3: memref<8x1xf32, #tpu.memory_space<vmem>>, %arg4: memref<1x288xf32, #tpu.memory_space<vmem>>, %arg5: memref<1x8x128xf32, #tpu.memory_space<vmem>>) attributes {dimension_semantics = [#tpu.dimension_semantics<parallel>], iteration_bounds = array<i64: 2>, scalar_prefetch = 0 : i64, scratch_operands = 0 : i64, tpu.core_type = #tpu.core_type<tc>, window_params = [{transform_indices = @transform_0, window_bounds = array<i64: 1, 4, 384>}, {pipeline_mode = #tpu.pipeline_mode<synchronous>, transform_indices = @transform_1, window_bounds = array<i64: 9, 8, 4>}, {pipeline_mode = #tpu.pipeline_mode<synchronous>, transform_indices = @transform_2, window_bounds = array<i64: 8, 1>}, {pipeline_mode = #tpu.pipeline_mode<synchronous>, transform_indices = @transform_3, window_bounds = array<i64: 1, 288>}, {transform_indices = @transform_4, window_bounds = array<i64: 1, 8, 128>}]} {
    %c0 = arith.constant 0 : index
    %c0_0 = arith.constant 0 : index
    %0 = vector.load %arg3[%c0, %c0_0] : memref<8x1xf32, #tpu.memory_space<vmem>>, vector<8x1xf32>
    %c0_1 = arith.constant 0 : index
    %c0_2 = arith.constant 0 : index
    %1 = vector.load %arg4[%c0_1, %c0_2] : memref<1x288xf32, #tpu.memory_space<vmem>>, vector<1x288xf32>
    %cst = arith.constant 0.000000e+00 : f32
    %2 = vector.broadcast %cst : f32 to vector<8x1xf32>
    %cst_3 = arith.constant 0.000000e+00 : f32
    %3 = vector.broadcast %cst_3 : f32 to vector<8x1xf32>
    %cst_4 = arith.constant 0.000000e+00 : f32
    %4 = vector.broadcast %cst_4 : f32 to vector<8x288xf32>
    %c0_5 = arith.constant 0 : index
    %c0_6 = arith.constant 0 : index
    %c0_7 = arith.constant 0 : index
    %5 = vector.load %arg1[%c0_5, %c0_6, %c0_7] : memref<1x4x384xbf16, #tpu.memory_space<vmem>>, vector<1x4x288xbf16>
    %6 = vector.shape_cast %5 : vector<1x4x288xbf16> to vector<4x288xbf16>
    %c0_8 = arith.constant 0 : index
    %c0_9 = arith.constant 0 : index
    %c0_10 = arith.constant 0 : index
    %7 = vector.load %arg2[%c0_8, %c0_9, %c0_10] : memref<9x8x4xbf16, #tpu.memory_space<vmem>>, vector<1x8x4xbf16>
    %8 = vector.shape_cast %7 : vector<1x8x4xbf16> to vector<8x4xbf16>
    %cst_11 = arith.constant dense<0.000000e+00> : vector<8x288xf32>
    %9 = tpu.matmul %8, %6, %cst_11 {dimension_numbers = #tpu.dot_dimension_numbers<[1], [0], [0], [1], [0, 0, 1, 1], [], []>} : vector<8x4xbf16>, vector<4x288xbf16>, vector<8x288xf32> -> vector<8x288xf32>
    %10 = arith.addf %4, %9 : vector<8x288xf32>
    %c0_12 = arith.constant 0 : index
    %c0_13 = arith.constant 0 : index
    %c1 = arith.constant 1 : index
    %11 = vector.load %arg1[%c0_12, %c0_13, %c1] : memref<1x4x384xbf16, #tpu.memory_space<vmem>>, vector<1x4x288xbf16>
    %12 = vector.shape_cast %11 : vector<1x4x288xbf16> to vector<4x288xbf16>
    %c1_14 = arith.constant 1 : index
    %c0_15 = arith.constant 0 : index
    %c0_16 = arith.constant 0 : index
    %13 = vector.load %arg2[%c1_14, %c0_15, %c0_16] : memref<9x8x4xbf16, #tpu.memory_space<vmem>>, vector<1x8x4xbf16>
    %14 = vector.shape_cast %13 : vector<1x8x4xbf16> to vector<8x4xbf16>
    %cst_17 = arith.constant dense<0.000000e+00> : vector<8x288xf32>
    %15 = tpu.matmul %14, %12, %cst_17 {dimension_numbers = #tpu.dot_dimension_numbers<[1], [0], [0], [1], [0, 0, 1, 1], [], []>} : vector<8x4xbf16>, vector<4x288xbf16>, vector<8x288xf32> -> vector<8x288xf32>
    %16 = arith.addf %10, %15 : vector<8x288xf32>
    %c0_18 = arith.constant 0 : index
    %c0_19 = arith.constant 0 : index
    %c2 = arith.constant 2 : index
    %17 = vector.load %arg1[%c0_18, %c0_19, %c2] : memref<1x4x384xbf16, #tpu.memory_space<vmem>>, vector<1x4x288xbf16>
    %18 = vector.shape_cast %17 : vector<1x4x288xbf16> to vector<4x288xbf16>
    %c2_20 = arith.constant 2 : index
    %c0_21 = arith.constant 0 : index
    %c0_22 = arith.constant 0 : index
    %19 = vector.load %arg2[%c2_20, %c0_21, %c0_22] : memref<9x8x4xbf16, #tpu.memory_space<vmem>>, vector<1x8x4xbf16>
    %20 = vector.shape_cast %19 : vector<1x8x4xbf16> to vector<8x4xbf16>
    %cst_23 = arith.constant dense<0.000000e+00> : vector<8x288xf32>
    %21 = tpu.matmul %20, %18, %cst_23 {dimension_numbers = #tpu.dot_dimension_numbers<[1], [0], [0], [1], [0, 0, 1, 1], [], []>} : vector<8x4xbf16>, vector<4x288xbf16>, vector<8x288xf32> -> vector<8x288xf32>
    %22 = arith.addf %16, %21 : vector<8x288xf32>
    %c0_24 = arith.constant 0 : index
    %c0_25 = arith.constant 0 : index
    %c18 = arith.constant 18 : index
    %23 = vector.load %arg1[%c0_24, %c0_25, %c18] : memref<1x4x384xbf16, #tpu.memory_space<vmem>>, vector<1x4x288xbf16>
    %24 = vector.shape_cast %23 : vector<1x4x288xbf16> to vector<4x288xbf16>
    %c3 = arith.constant 3 : index
    %c0_26 = arith.constant 0 : index
    %c0_27 = arith.constant 0 : index
    %25 = vector.load %arg2[%c3, %c0_26, %c0_27] : memref<9x8x4xbf16, #tpu.memory_space<vmem>>, vector<1x8x4xbf16>
    %26 = vector.shape_cast %25 : vector<1x8x4xbf16> to vector<8x4xbf16>
    %cst_28 = arith.constant dense<0.000000e+00> : vector<8x288xf32>
    %27 = tpu.matmul %26, %24, %cst_28 {dimension_numbers = #tpu.dot_dimension_numbers<[1], [0], [0], [1], [0, 0, 1, 1], [], []>} : vector<8x4xbf16>, vector<4x288xbf16>, vector<8x288xf32> -> vector<8x288xf32>
    %28 = arith.addf %22, %27 : vector<8x288xf32>
    %c0_29 = arith.constant 0 : index
    %c0_30 = arith.constant 0 : index
    %c19 = arith.constant 19 : index
    %29 = vector.load %arg1[%c0_29, %c0_30, %c19] : memref<1x4x384xbf16, #tpu.memory_space<vmem>>, vector<1x4x288xbf16>
    %30 = vector.shape_cast %29 : vector<1x4x288xbf16> to vector<4x288xbf16>
    %c4 = arith.constant 4 : index
    %c0_31 = arith.constant 0 : index
    %c0_32 = arith.constant 0 : index
    %31 = vector.load %arg2[%c4, %c0_31, %c0_32] : memref<9x8x4xbf16, #tpu.memory_space<vmem>>, vector<1x8x4xbf16>
    %32 = vector.shape_cast %31 : vector<1x8x4xbf16> to vector<8x4xbf16>
    %cst_33 = arith.constant dense<0.000000e+00> : vector<8x288xf32>
    %33 = tpu.matmul %32, %30, %cst_33 {dimension_numbers = #tpu.dot_dimension_numbers<[1], [0], [0], [1], [0, 0, 1, 1], [], []>} : vector<8x4xbf16>, vector<4x288xbf16>, vector<8x288xf32> -> vector<8x288xf32>
    %34 = arith.addf %28, %33 : vector<8x288xf32>
    %c0_34 = arith.constant 0 : index
    %c0_35 = arith.constant 0 : index
    %c20 = arith.constant 20 : index
    %35 = vector.load %arg1[%c0_34, %c0_35, %c20] : memref<1x4x384xbf16, #tpu.memory_space<vmem>>, vector<1x4x288xbf16>
    %36 = vector.shape_cast %35 : vector<1x4x288xbf16> to vector<4x288xbf16>
    %c5 = arith.constant 5 : index
    %c0_36 = arith.constant 0 : index
    %c0_37 = arith.constant 0 : index
    %37 = vector.load %arg2[%c5, %c0_36, %c0_37] : memref<9x8x4xbf16, #tpu.memory_space<vmem>>, vector<1x8x4xbf16>
    %38 = vector.shape_cast %37 : vector<1x8x4xbf16> to vector<8x4xbf16>
    %cst_38 = arith.constant dense<0.000000e+00> : vector<8x288xf32>
    %39 = tpu.matmul %38, %36, %cst_38 {dimension_numbers = #tpu.dot_dimension_numbers<[1], [0], [0], [1], [0, 0, 1, 1], [], []>} : vector<8x4xbf16>, vector<4x288xbf16>, vector<8x288xf32> -> vector<8x288xf32>
    %40 = arith.addf %34, %39 : vector<8x288xf32>
    %c0_39 = arith.constant 0 : index
    %c0_40 = arith.constant 0 : index
    %c36 = arith.constant 36 : index
    %41 = vector.load %arg1[%c0_39, %c0_40, %c36] : memref<1x4x384xbf16, #tpu.memory_space<vmem>>, vector<1x4x288xbf16>
    %42 = vector.shape_cast %41 : vector<1x4x288xbf16> to vector<4x288xbf16>
    %c6 = arith.constant 6 : index
    %c0_41 = arith.constant 0 : index
    %c0_42 = arith.constant 0 : index
    %43 = vector.load %arg2[%c6, %c0_41, %c0_42] : memref<9x8x4xbf16, #tpu.memory_space<vmem>>, vector<1x8x4xbf16>
    %44 = vector.shape_cast %43 : vector<1x8x4xbf16> to vector<8x4xbf16>
    %cst_43 = arith.constant dense<0.000000e+00> : vector<8x288xf32>
    %45 = tpu.matmul %44, %42, %cst_43 {dimension_numbers = #tpu.dot_dimension_numbers<[1], [0], [0], [1], [0, 0, 1, 1], [], []>} : vector<8x4xbf16>, vector<4x288xbf16>, vector<8x288xf32> -> vector<8x288xf32>
    %46 = arith.addf %40, %45 : vector<8x288xf32>
    %c0_44 = arith.constant 0 : index
    %c0_45 = arith.constant 0 : index
    %c37 = arith.constant 37 : index
    %47 = vector.load %arg1[%c0_44, %c0_45, %c37] : memref<1x4x384xbf16, #tpu.memory_space<vmem>>, vector<1x4x288xbf16>
    %48 = vector.shape_cast %47 : vector<1x4x288xbf16> to vector<4x288xbf16>
    %c7 = arith.constant 7 : index
    %c0_46 = arith.constant 0 : index
    %c0_47 = arith.constant 0 : index
    %49 = vector.load %arg2[%c7, %c0_46, %c0_47] : memref<9x8x4xbf16, #tpu.memory_space<vmem>>, vector<1x8x4xbf16>
    %50 = vector.shape_cast %49 : vector<1x8x4xbf16> to vector<8x4xbf16>
    %cst_48 = arith.constant dense<0.000000e+00> : vector<8x288xf32>
    %51 = tpu.matmul %50, %48, %cst_48 {dimension_numbers = #tpu.dot_dimension_numbers<[1], [0], [0], [1], [0, 0, 1, 1], [], []>} : vector<8x4xbf16>, vector<4x288xbf16>, vector<8x288xf32> -> vector<8x288xf32>
    %52 = arith.addf %46, %51 : vector<8x288xf32>
    %c0_49 = arith.constant 0 : index
    %c0_50 = arith.constant 0 : index
    %c38 = arith.constant 38 : index
    %53 = vector.load %arg1[%c0_49, %c0_50, %c38] : memref<1x4x384xbf16, #tpu.memory_space<vmem>>, vector<1x4x288xbf16>
    %54 = vector.shape_cast %53 : vector<1x4x288xbf16> to vector<4x288xbf16>
    %c8 = arith.constant 8 : index
    %c0_51 = arith.constant 0 : index
    %c0_52 = arith.constant 0 : index
    %55 = vector.load %arg2[%c8, %c0_51, %c0_52] : memref<9x8x4xbf16, #tpu.memory_space<vmem>>, vector<1x8x4xbf16>
    %56 = vector.shape_cast %55 : vector<1x8x4xbf16> to vector<8x4xbf16>
    %cst_53 = arith.constant dense<0.000000e+00> : vector<8x288xf32>
    %57 = tpu.matmul %56, %54, %cst_53 {dimension_numbers = #tpu.dot_dimension_numbers<[1], [0], [0], [1], [0, 0, 1, 1], [], []>} : vector<8x4xbf16>, vector<4x288xbf16>, vector<8x288xf32> -> vector<8x288xf32>
    %58 = arith.addf %52, %57 : vector<8x288xf32>
    %cst_54 = arith.constant 0.000000e+00 : f32
    %59 = vector.broadcast %cst_54 : f32 to vector<8x288xf32>
    %60 = arith.cmpf oge, %58, %59 : vector<8x288xf32>
    %61 = vector.broadcast %0 : vector<8x1xf32> to vector<8x288xf32>
    %62 = arith.mulf %61, %58 : vector<8x288xf32>
    %63 = arith.select %60, %58, %62 : vector<8x288xi1>, vector<8x288xf32>
    %64 = vector.broadcast %1 : vector<1x288xf32> to vector<8x288xf32>
    %65 = arith.mulf %63, %64 : vector<8x288xf32>
    %cst_55 = arith.constant dense<0.000000e+00> : vector<8xf32>
    %66 = vector.multi_reduction <add>, %65, %cst_55 [1] : vector<8x288xf32> to vector<8xf32>
    %67 = vector.shape_cast %66 : vector<8xf32> to vector<8x1xf32>
    %68 = arith.addf %2, %67 : vector<8x1xf32>
    %69 = arith.mulf %65, %63 : vector<8x288xf32>
    %cst_56 = arith.constant dense<0.000000e+00> : vector<8xf32>
    %70 = vector.multi_reduction <add>, %69, %cst_56 [1] : vector<8x288xf32> to vector<8xf32>
    %71 = vector.shape_cast %70 : vector<8xf32> to vector<8x1xf32>
    %72 = arith.addf %3, %71 : vector<8x1xf32>
    %cst_57 = arith.constant 0.000000e+00 : f32
    %73 = vector.broadcast %cst_57 : f32 to vector<1x8x128xf32>
    %c0_58 = arith.constant 0 : index
    %c0_59 = arith.constant 0 : index
    %c0_60 = arith.constant 0 : index
    %74 = vector.load %arg5[%c0_58, %c0_59, %c0_60] : memref<1x8x128xf32, #tpu.memory_space<vmem>>, vector<1x8x128xf32>
    tpu.vector_store %arg5[%c0_58, %c0_59, %c0_60], %73 {strides = array<i32>} : memref<1x8x128xf32, #tpu.memory_space<vmem>>, vector<1x8x128xf32>,
    %c0_61 = arith.constant 0 : index
    %c0_62 = arith.constant 0 : index
    %c0_63 = arith.constant 0 : index
    %75 = vector.load %arg5[%c0_61, %c0_62, %c0_63] : memref<1x8x128xf32, #tpu.memory_space<vmem>>, vector<1x8x1xf32>
    %76 = vector.shape_cast %75 : vector<1x8x1xf32> to vector<8x1xf32>
    %77 = vector.shape_cast %68 : vector<8x1xf32> to vector<1x8x1xf32>
    tpu.vector_store %arg5[%c0_61, %c0_62, %c0_63], %77 {strides = array<i32>} : memref<1x8x128xf32, #tpu.memory_space<vmem>>, vector<1x8x1xf32>,
    %c0_64 = arith.constant 0 : index
    %c0_65 = arith.constant 0 : index
    %c1_66 = arith.constant 1 : index
    %78 = vector.load %arg5[%c0_64, %c0_65, %c1_66] : memref<1x8x128xf32, #tpu.memory_space<vmem>>, vector<1x8x1xf32>
    %79 = vector.shape_cast %78 : vector<1x8x1xf32> to vector<8x1xf32>
    %80 = vector.shape_cast %72 : vector<8x1xf32> to vector<1x8x1xf32>
    tpu.vector_store %arg5[%c0_64, %c0_65, %c1_66], %80 {strides = array<i32>} : memref<1x8x128xf32, #tpu.memory_space<vmem>>, vector<1x8x1xf32>,
    return
  }
  func.func @transform_0(%arg0: i32) -> (i32, i32, i32) {
    %c0_i32 = arith.constant 0 : i32
    %c0_i32_0 = arith.constant 0 : i32
    %c0_i32_1 = arith.constant 0 : i32
    return %arg0, %c0_i32, %c0_i32_0 : i32, i32, i32
  }
  func.func @transform_1(%arg0: i32) -> (i32, i32, i32) {
    %c0_i32 = arith.constant 0 : i32
    %c0_i32_0 = arith.constant 0 : i32
    %c0_i32_1 = arith.constant 0 : i32
    %c0_i32_2 = arith.constant 0 : i32
    return %c0_i32, %c0_i32_0, %c0_i32_1 : i32, i32, i32
  }
  func.func @transform_2(%arg0: i32) -> (i32, i32) {
    %c0_i32 = arith.constant 0 : i32
    %c0_i32_0 = arith.constant 0 : i32
    %c0_i32_1 = arith.constant 0 : i32
    return %c0_i32, %c0_i32_0 : i32, i32
  }
  func.func @transform_3(%arg0: i32) -> (i32, i32) {
    %c0_i32 = arith.constant 0 : i32
    %c0_i32_0 = arith.constant 0 : i32
    %c0_i32_1 = arith.constant 0 : i32
    return %c0_i32, %c0_i32_0 : i32, i32
  }
  func.func @transform_4(%arg0: i32) -> (i32, i32, i32) {
    %c0_i32 = arith.constant 0 : i32
    %c0_i32_0 = arith.constant 0 : i32
    %c0_i32_1 = arith.constant 0 : i32
    return %arg0, %c0_i32, %c0_i32_0 : i32, i32, i32
  }
}

module attributes {stable_mosaic.version = 11 : i64} {
  func.func @_conv_prelu_bn_kernel(%arg0: i32, %arg1: memref<1x4x384xbf16, #tpu.memory_space<vmem>>, %arg2: memref<9x8x4xbf16, #tpu.memory_space<vmem>>, %arg3: memref<8x1xf32, #tpu.memory_space<vmem>>, %arg4: memref<8x2xf32, #tpu.memory_space<vmem>>, %arg5: memref<1x8x16x16xf32, #tpu.memory_space<vmem>>) attributes {dimension_semantics = [#tpu.dimension_semantics<parallel>], iteration_bounds = array<i64: 2>, scalar_prefetch = 0 : i64, scratch_operands = 0 : i64, tpu.core_type = #tpu.core_type<tc>, window_params = [{transform_indices = @transform_0, window_bounds = array<i64: 1, 4, 384>}, {pipeline_mode = #tpu.pipeline_mode<synchronous>, transform_indices = @transform_1, window_bounds = array<i64: 9, 8, 4>}, {pipeline_mode = #tpu.pipeline_mode<synchronous>, transform_indices = @transform_2, window_bounds = array<i64: 8, 1>}, {pipeline_mode = #tpu.pipeline_mode<synchronous>, transform_indices = @transform_3, window_bounds = array<i64: 8, 2>}, {transform_indices = @transform_4, window_bounds = array<i64: 1, 8, 16, 16>}]} {
    %c0 = arith.constant 0 : index
    %c0_0 = arith.constant 0 : index
    %0 = vector.load %arg3[%c0, %c0_0] : memref<8x1xf32, #tpu.memory_space<vmem>>, vector<8x1xf32>
    %c0_1 = arith.constant 0 : index
    %c0_2 = arith.constant 0 : index
    %1 = vector.load %arg4[%c0_1, %c0_2] : memref<8x2xf32, #tpu.memory_space<vmem>>, vector<8x1xf32>
    %c0_3 = arith.constant 0 : index
    %c1 = arith.constant 1 : index
    %2 = vector.load %arg4[%c0_3, %c1] : memref<8x2xf32, #tpu.memory_space<vmem>>, vector<8x1xf32>
    %cst = arith.constant 0.000000e+00 : f32
    %3 = vector.broadcast %cst : f32 to vector<8x288xf32>
    %c0_4 = arith.constant 0 : index
    %c0_5 = arith.constant 0 : index
    %c0_6 = arith.constant 0 : index
    %4 = vector.load %arg1[%c0_4, %c0_5, %c0_6] : memref<1x4x384xbf16, #tpu.memory_space<vmem>>, vector<1x4x288xbf16>
    %5 = vector.shape_cast %4 : vector<1x4x288xbf16> to vector<4x288xbf16>
    %c0_7 = arith.constant 0 : index
    %c0_8 = arith.constant 0 : index
    %c0_9 = arith.constant 0 : index
    %6 = vector.load %arg2[%c0_7, %c0_8, %c0_9] : memref<9x8x4xbf16, #tpu.memory_space<vmem>>, vector<1x8x4xbf16>
    %7 = vector.shape_cast %6 : vector<1x8x4xbf16> to vector<8x4xbf16>
    %cst_10 = arith.constant dense<0.000000e+00> : vector<8x288xf32>
    %8 = tpu.matmul %7, %5, %cst_10 {dimension_numbers = #tpu.dot_dimension_numbers<[1], [0], [0], [1], [0, 0, 1, 1], [], []>} : vector<8x4xbf16>, vector<4x288xbf16>, vector<8x288xf32> -> vector<8x288xf32>
    %9 = arith.addf %3, %8 : vector<8x288xf32>
    %c0_11 = arith.constant 0 : index
    %c0_12 = arith.constant 0 : index
    %c1_13 = arith.constant 1 : index
    %10 = vector.load %arg1[%c0_11, %c0_12, %c1_13] : memref<1x4x384xbf16, #tpu.memory_space<vmem>>, vector<1x4x288xbf16>
    %11 = vector.shape_cast %10 : vector<1x4x288xbf16> to vector<4x288xbf16>
    %c1_14 = arith.constant 1 : index
    %c0_15 = arith.constant 0 : index
    %c0_16 = arith.constant 0 : index
    %12 = vector.load %arg2[%c1_14, %c0_15, %c0_16] : memref<9x8x4xbf16, #tpu.memory_space<vmem>>, vector<1x8x4xbf16>
    %13 = vector.shape_cast %12 : vector<1x8x4xbf16> to vector<8x4xbf16>
    %cst_17 = arith.constant dense<0.000000e+00> : vector<8x288xf32>
    %14 = tpu.matmul %13, %11, %cst_17 {dimension_numbers = #tpu.dot_dimension_numbers<[1], [0], [0], [1], [0, 0, 1, 1], [], []>} : vector<8x4xbf16>, vector<4x288xbf16>, vector<8x288xf32> -> vector<8x288xf32>
    %15 = arith.addf %9, %14 : vector<8x288xf32>
    %c0_18 = arith.constant 0 : index
    %c0_19 = arith.constant 0 : index
    %c2 = arith.constant 2 : index
    %16 = vector.load %arg1[%c0_18, %c0_19, %c2] : memref<1x4x384xbf16, #tpu.memory_space<vmem>>, vector<1x4x288xbf16>
    %17 = vector.shape_cast %16 : vector<1x4x288xbf16> to vector<4x288xbf16>
    %c2_20 = arith.constant 2 : index
    %c0_21 = arith.constant 0 : index
    %c0_22 = arith.constant 0 : index
    %18 = vector.load %arg2[%c2_20, %c0_21, %c0_22] : memref<9x8x4xbf16, #tpu.memory_space<vmem>>, vector<1x8x4xbf16>
    %19 = vector.shape_cast %18 : vector<1x8x4xbf16> to vector<8x4xbf16>
    %cst_23 = arith.constant dense<0.000000e+00> : vector<8x288xf32>
    %20 = tpu.matmul %19, %17, %cst_23 {dimension_numbers = #tpu.dot_dimension_numbers<[1], [0], [0], [1], [0, 0, 1, 1], [], []>} : vector<8x4xbf16>, vector<4x288xbf16>, vector<8x288xf32> -> vector<8x288xf32>
    %21 = arith.addf %15, %20 : vector<8x288xf32>
    %c0_24 = arith.constant 0 : index
    %c0_25 = arith.constant 0 : index
    %c18 = arith.constant 18 : index
    %22 = vector.load %arg1[%c0_24, %c0_25, %c18] : memref<1x4x384xbf16, #tpu.memory_space<vmem>>, vector<1x4x288xbf16>
    %23 = vector.shape_cast %22 : vector<1x4x288xbf16> to vector<4x288xbf16>
    %c3 = arith.constant 3 : index
    %c0_26 = arith.constant 0 : index
    %c0_27 = arith.constant 0 : index
    %24 = vector.load %arg2[%c3, %c0_26, %c0_27] : memref<9x8x4xbf16, #tpu.memory_space<vmem>>, vector<1x8x4xbf16>
    %25 = vector.shape_cast %24 : vector<1x8x4xbf16> to vector<8x4xbf16>
    %cst_28 = arith.constant dense<0.000000e+00> : vector<8x288xf32>
    %26 = tpu.matmul %25, %23, %cst_28 {dimension_numbers = #tpu.dot_dimension_numbers<[1], [0], [0], [1], [0, 0, 1, 1], [], []>} : vector<8x4xbf16>, vector<4x288xbf16>, vector<8x288xf32> -> vector<8x288xf32>
    %27 = arith.addf %21, %26 : vector<8x288xf32>
    %c0_29 = arith.constant 0 : index
    %c0_30 = arith.constant 0 : index
    %c19 = arith.constant 19 : index
    %28 = vector.load %arg1[%c0_29, %c0_30, %c19] : memref<1x4x384xbf16, #tpu.memory_space<vmem>>, vector<1x4x288xbf16>
    %29 = vector.shape_cast %28 : vector<1x4x288xbf16> to vector<4x288xbf16>
    %c4 = arith.constant 4 : index
    %c0_31 = arith.constant 0 : index
    %c0_32 = arith.constant 0 : index
    %30 = vector.load %arg2[%c4, %c0_31, %c0_32] : memref<9x8x4xbf16, #tpu.memory_space<vmem>>, vector<1x8x4xbf16>
    %31 = vector.shape_cast %30 : vector<1x8x4xbf16> to vector<8x4xbf16>
    %cst_33 = arith.constant dense<0.000000e+00> : vector<8x288xf32>
    %32 = tpu.matmul %31, %29, %cst_33 {dimension_numbers = #tpu.dot_dimension_numbers<[1], [0], [0], [1], [0, 0, 1, 1], [], []>} : vector<8x4xbf16>, vector<4x288xbf16>, vector<8x288xf32> -> vector<8x288xf32>
    %33 = arith.addf %27, %32 : vector<8x288xf32>
    %c0_34 = arith.constant 0 : index
    %c0_35 = arith.constant 0 : index
    %c20 = arith.constant 20 : index
    %34 = vector.load %arg1[%c0_34, %c0_35, %c20] : memref<1x4x384xbf16, #tpu.memory_space<vmem>>, vector<1x4x288xbf16>
    %35 = vector.shape_cast %34 : vector<1x4x288xbf16> to vector<4x288xbf16>
    %c5 = arith.constant 5 : index
    %c0_36 = arith.constant 0 : index
    %c0_37 = arith.constant 0 : index
    %36 = vector.load %arg2[%c5, %c0_36, %c0_37] : memref<9x8x4xbf16, #tpu.memory_space<vmem>>, vector<1x8x4xbf16>
    %37 = vector.shape_cast %36 : vector<1x8x4xbf16> to vector<8x4xbf16>
    %cst_38 = arith.constant dense<0.000000e+00> : vector<8x288xf32>
    %38 = tpu.matmul %37, %35, %cst_38 {dimension_numbers = #tpu.dot_dimension_numbers<[1], [0], [0], [1], [0, 0, 1, 1], [], []>} : vector<8x4xbf16>, vector<4x288xbf16>, vector<8x288xf32> -> vector<8x288xf32>
    %39 = arith.addf %33, %38 : vector<8x288xf32>
    %c0_39 = arith.constant 0 : index
    %c0_40 = arith.constant 0 : index
    %c36 = arith.constant 36 : index
    %40 = vector.load %arg1[%c0_39, %c0_40, %c36] : memref<1x4x384xbf16, #tpu.memory_space<vmem>>, vector<1x4x288xbf16>
    %41 = vector.shape_cast %40 : vector<1x4x288xbf16> to vector<4x288xbf16>
    %c6 = arith.constant 6 : index
    %c0_41 = arith.constant 0 : index
    %c0_42 = arith.constant 0 : index
    %42 = vector.load %arg2[%c6, %c0_41, %c0_42] : memref<9x8x4xbf16, #tpu.memory_space<vmem>>, vector<1x8x4xbf16>
    %43 = vector.shape_cast %42 : vector<1x8x4xbf16> to vector<8x4xbf16>
    %cst_43 = arith.constant dense<0.000000e+00> : vector<8x288xf32>
    %44 = tpu.matmul %43, %41, %cst_43 {dimension_numbers = #tpu.dot_dimension_numbers<[1], [0], [0], [1], [0, 0, 1, 1], [], []>} : vector<8x4xbf16>, vector<4x288xbf16>, vector<8x288xf32> -> vector<8x288xf32>
    %45 = arith.addf %39, %44 : vector<8x288xf32>
    %c0_44 = arith.constant 0 : index
    %c0_45 = arith.constant 0 : index
    %c37 = arith.constant 37 : index
    %46 = vector.load %arg1[%c0_44, %c0_45, %c37] : memref<1x4x384xbf16, #tpu.memory_space<vmem>>, vector<1x4x288xbf16>
    %47 = vector.shape_cast %46 : vector<1x4x288xbf16> to vector<4x288xbf16>
    %c7 = arith.constant 7 : index
    %c0_46 = arith.constant 0 : index
    %c0_47 = arith.constant 0 : index
    %48 = vector.load %arg2[%c7, %c0_46, %c0_47] : memref<9x8x4xbf16, #tpu.memory_space<vmem>>, vector<1x8x4xbf16>
    %49 = vector.shape_cast %48 : vector<1x8x4xbf16> to vector<8x4xbf16>
    %cst_48 = arith.constant dense<0.000000e+00> : vector<8x288xf32>
    %50 = tpu.matmul %49, %47, %cst_48 {dimension_numbers = #tpu.dot_dimension_numbers<[1], [0], [0], [1], [0, 0, 1, 1], [], []>} : vector<8x4xbf16>, vector<4x288xbf16>, vector<8x288xf32> -> vector<8x288xf32>
    %51 = arith.addf %45, %50 : vector<8x288xf32>
    %c0_49 = arith.constant 0 : index
    %c0_50 = arith.constant 0 : index
    %c38 = arith.constant 38 : index
    %52 = vector.load %arg1[%c0_49, %c0_50, %c38] : memref<1x4x384xbf16, #tpu.memory_space<vmem>>, vector<1x4x288xbf16>
    %53 = vector.shape_cast %52 : vector<1x4x288xbf16> to vector<4x288xbf16>
    %c8 = arith.constant 8 : index
    %c0_51 = arith.constant 0 : index
    %c0_52 = arith.constant 0 : index
    %54 = vector.load %arg2[%c8, %c0_51, %c0_52] : memref<9x8x4xbf16, #tpu.memory_space<vmem>>, vector<1x8x4xbf16>
    %55 = vector.shape_cast %54 : vector<1x8x4xbf16> to vector<8x4xbf16>
    %cst_53 = arith.constant dense<0.000000e+00> : vector<8x288xf32>
    %56 = tpu.matmul %55, %53, %cst_53 {dimension_numbers = #tpu.dot_dimension_numbers<[1], [0], [0], [1], [0, 0, 1, 1], [], []>} : vector<8x4xbf16>, vector<4x288xbf16>, vector<8x288xf32> -> vector<8x288xf32>
    %57 = arith.addf %51, %56 : vector<8x288xf32>
    %cst_54 = arith.constant 0.000000e+00 : f32
    %58 = vector.broadcast %cst_54 : f32 to vector<8x288xf32>
    %59 = arith.cmpf oge, %57, %58 : vector<8x288xf32>
    %60 = vector.broadcast %0 : vector<8x1xf32> to vector<8x288xf32>
    %61 = arith.mulf %60, %57 : vector<8x288xf32>
    %62 = arith.select %59, %57, %61 : vector<8x288xi1>, vector<8x288xf32>
    %63 = vector.broadcast %1 : vector<8x1xf32> to vector<8x288xf32>
    %64 = arith.mulf %62, %63 : vector<8x288xf32>
    %65 = vector.broadcast %2 : vector<8x1xf32> to vector<8x288xf32>
    %66 = arith.addf %64, %65 : vector<8x288xf32>
    %67 = vector.extract_strided_slice %66 {offsets = [0, 0], sizes = [8, 16], strides = [1, 1]} : vector<8x288xf32> to vector<8x16xf32>
    %c0_55 = arith.constant 0 : index
    %c0_56 = arith.constant 0 : index
    %c0_57 = arith.constant 0 : index
    %c0_58 = arith.constant 0 : index
    %68 = vector.load %arg5[%c0_55, %c0_56, %c0_57, %c0_58] : memref<1x8x16x16xf32, #tpu.memory_space<vmem>>, vector<1x8x1x16xf32>
    %69 = vector.shape_cast %68 : vector<1x8x1x16xf32> to vector<8x16xf32>
    %70 = vector.shape_cast %67 : vector<8x16xf32> to vector<1x8x1x16xf32>
    tpu.vector_store %arg5[%c0_55, %c0_56, %c0_57, %c0_58], %70 {strides = array<i32>} : memref<1x8x16x16xf32, #tpu.memory_space<vmem>>, vector<1x8x1x16xf32>,
    %71 = vector.extract_strided_slice %66 {offsets = [0, 18], sizes = [8, 16], strides = [1, 1]} : vector<8x288xf32> to vector<8x16xf32>
    %c0_59 = arith.constant 0 : index
    %c0_60 = arith.constant 0 : index
    %c1_61 = arith.constant 1 : index
    %c0_62 = arith.constant 0 : index
    %72 = vector.load %arg5[%c0_59, %c0_60, %c1_61, %c0_62] : memref<1x8x16x16xf32, #tpu.memory_space<vmem>>, vector<1x8x1x16xf32>
    %73 = vector.shape_cast %72 : vector<1x8x1x16xf32> to vector<8x16xf32>
    %74 = vector.shape_cast %71 : vector<8x16xf32> to vector<1x8x1x16xf32>
    tpu.vector_store %arg5[%c0_59, %c0_60, %c1_61, %c0_62], %74 {strides = array<i32>} : memref<1x8x16x16xf32, #tpu.memory_space<vmem>>, vector<1x8x1x16xf32>,
    %75 = vector.extract_strided_slice %66 {offsets = [0, 36], sizes = [8, 16], strides = [1, 1]} : vector<8x288xf32> to vector<8x16xf32>
    %c0_63 = arith.constant 0 : index
    %c0_64 = arith.constant 0 : index
    %c2_65 = arith.constant 2 : index
    %c0_66 = arith.constant 0 : index
    %76 = vector.load %arg5[%c0_63, %c0_64, %c2_65, %c0_66] : memref<1x8x16x16xf32, #tpu.memory_space<vmem>>, vector<1x8x1x16xf32>
    %77 = vector.shape_cast %76 : vector<1x8x1x16xf32> to vector<8x16xf32>
    %78 = vector.shape_cast %75 : vector<8x16xf32> to vector<1x8x1x16xf32>
    tpu.vector_store %arg5[%c0_63, %c0_64, %c2_65, %c0_66], %78 {strides = array<i32>} : memref<1x8x16x16xf32, #tpu.memory_space<vmem>>, vector<1x8x1x16xf32>,
    %79 = vector.extract_strided_slice %66 {offsets = [0, 54], sizes = [8, 16], strides = [1, 1]} : vector<8x288xf32> to vector<8x16xf32>
    %c0_67 = arith.constant 0 : index
    %c0_68 = arith.constant 0 : index
    %c3_69 = arith.constant 3 : index
    %c0_70 = arith.constant 0 : index
    %80 = vector.load %arg5[%c0_67, %c0_68, %c3_69, %c0_70] : memref<1x8x16x16xf32, #tpu.memory_space<vmem>>, vector<1x8x1x16xf32>
    %81 = vector.shape_cast %80 : vector<1x8x1x16xf32> to vector<8x16xf32>
    %82 = vector.shape_cast %79 : vector<8x16xf32> to vector<1x8x1x16xf32>
    tpu.vector_store %arg5[%c0_67, %c0_68, %c3_69, %c0_70], %82 {strides = array<i32>} : memref<1x8x16x16xf32, #tpu.memory_space<vmem>>, vector<1x8x1x16xf32>,
    %83 = vector.extract_strided_slice %66 {offsets = [0, 72], sizes = [8, 16], strides = [1, 1]} : vector<8x288xf32> to vector<8x16xf32>
    %c0_71 = arith.constant 0 : index
    %c0_72 = arith.constant 0 : index
    %c4_73 = arith.constant 4 : index
    %c0_74 = arith.constant 0 : index
    %84 = vector.load %arg5[%c0_71, %c0_72, %c4_73, %c0_74] : memref<1x8x16x16xf32, #tpu.memory_space<vmem>>, vector<1x8x1x16xf32>
    %85 = vector.shape_cast %84 : vector<1x8x1x16xf32> to vector<8x16xf32>
    %86 = vector.shape_cast %83 : vector<8x16xf32> to vector<1x8x1x16xf32>
    tpu.vector_store %arg5[%c0_71, %c0_72, %c4_73, %c0_74], %86 {strides = array<i32>} : memref<1x8x16x16xf32, #tpu.memory_space<vmem>>, vector<1x8x1x16xf32>,
    %87 = vector.extract_strided_slice %66 {offsets = [0, 90], sizes = [8, 16], strides = [1, 1]} : vector<8x288xf32> to vector<8x16xf32>
    %c0_75 = arith.constant 0 : index
    %c0_76 = arith.constant 0 : index
    %c5_77 = arith.constant 5 : index
    %c0_78 = arith.constant 0 : index
    %88 = vector.load %arg5[%c0_75, %c0_76, %c5_77, %c0_78] : memref<1x8x16x16xf32, #tpu.memory_space<vmem>>, vector<1x8x1x16xf32>
    %89 = vector.shape_cast %88 : vector<1x8x1x16xf32> to vector<8x16xf32>
    %90 = vector.shape_cast %87 : vector<8x16xf32> to vector<1x8x1x16xf32>
    tpu.vector_store %arg5[%c0_75, %c0_76, %c5_77, %c0_78], %90 {strides = array<i32>} : memref<1x8x16x16xf32, #tpu.memory_space<vmem>>, vector<1x8x1x16xf32>,
    %91 = vector.extract_strided_slice %66 {offsets = [0, 108], sizes = [8, 16], strides = [1, 1]} : vector<8x288xf32> to vector<8x16xf32>
    %c0_79 = arith.constant 0 : index
    %c0_80 = arith.constant 0 : index
    %c6_81 = arith.constant 6 : index
    %c0_82 = arith.constant 0 : index
    %92 = vector.load %arg5[%c0_79, %c0_80, %c6_81, %c0_82] : memref<1x8x16x16xf32, #tpu.memory_space<vmem>>, vector<1x8x1x16xf32>
    %93 = vector.shape_cast %92 : vector<1x8x1x16xf32> to vector<8x16xf32>
    %94 = vector.shape_cast %91 : vector<8x16xf32> to vector<1x8x1x16xf32>
    tpu.vector_store %arg5[%c0_79, %c0_80, %c6_81, %c0_82], %94 {strides = array<i32>} : memref<1x8x16x16xf32, #tpu.memory_space<vmem>>, vector<1x8x1x16xf32>,
    %95 = vector.extract_strided_slice %66 {offsets = [0, 126], sizes = [8, 16], strides = [1, 1]} : vector<8x288xf32> to vector<8x16xf32>
    %c0_83 = arith.constant 0 : index
    %c0_84 = arith.constant 0 : index
    %c7_85 = arith.constant 7 : index
    %c0_86 = arith.constant 0 : index
    %96 = vector.load %arg5[%c0_83, %c0_84, %c7_85, %c0_86] : memref<1x8x16x16xf32, #tpu.memory_space<vmem>>, vector<1x8x1x16xf32>
    %97 = vector.shape_cast %96 : vector<1x8x1x16xf32> to vector<8x16xf32>
    %98 = vector.shape_cast %95 : vector<8x16xf32> to vector<1x8x1x16xf32>
    tpu.vector_store %arg5[%c0_83, %c0_84, %c7_85, %c0_86], %98 {strides = array<i32>} : memref<1x8x16x16xf32, #tpu.memory_space<vmem>>, vector<1x8x1x16xf32>,
    %99 = vector.extract_strided_slice %66 {offsets = [0, 144], sizes = [8, 16], strides = [1, 1]} : vector<8x288xf32> to vector<8x16xf32>
    %c0_87 = arith.constant 0 : index
    %c0_88 = arith.constant 0 : index
    %c8_89 = arith.constant 8 : index
    %c0_90 = arith.constant 0 : index
    %100 = vector.load %arg5[%c0_87, %c0_88, %c8_89, %c0_90] : memref<1x8x16x16xf32, #tpu.memory_space<vmem>>, vector<1x8x1x16xf32>
    %101 = vector.shape_cast %100 : vector<1x8x1x16xf32> to vector<8x16xf32>
    %102 = vector.shape_cast %99 : vector<8x16xf32> to vector<1x8x1x16xf32>
    tpu.vector_store %arg5[%c0_87, %c0_88, %c8_89, %c0_90], %102 {strides = array<i32>} : memref<1x8x16x16xf32, #tpu.memory_space<vmem>>, vector<1x8x1x16xf32>,
    %103 = vector.extract_strided_slice %66 {offsets = [0, 162], sizes = [8, 16], strides = [1, 1]} : vector<8x288xf32> to vector<8x16xf32>
    %c0_91 = arith.constant 0 : index
    %c0_92 = arith.constant 0 : index
    %c9 = arith.constant 9 : index
    %c0_93 = arith.constant 0 : index
    %104 = vector.load %arg5[%c0_91, %c0_92, %c9, %c0_93] : memref<1x8x16x16xf32, #tpu.memory_space<vmem>>, vector<1x8x1x16xf32>
    %105 = vector.shape_cast %104 : vector<1x8x1x16xf32> to vector<8x16xf32>
    %106 = vector.shape_cast %103 : vector<8x16xf32> to vector<1x8x1x16xf32>
    tpu.vector_store %arg5[%c0_91, %c0_92, %c9, %c0_93], %106 {strides = array<i32>} : memref<1x8x16x16xf32, #tpu.memory_space<vmem>>, vector<1x8x1x16xf32>,
    %107 = vector.extract_strided_slice %66 {offsets = [0, 180], sizes = [8, 16], strides = [1, 1]} : vector<8x288xf32> to vector<8x16xf32>
    %c0_94 = arith.constant 0 : index
    %c0_95 = arith.constant 0 : index
    %c10 = arith.constant 10 : index
    %c0_96 = arith.constant 0 : index
    %108 = vector.load %arg5[%c0_94, %c0_95, %c10, %c0_96] : memref<1x8x16x16xf32, #tpu.memory_space<vmem>>, vector<1x8x1x16xf32>
    %109 = vector.shape_cast %108 : vector<1x8x1x16xf32> to vector<8x16xf32>
    %110 = vector.shape_cast %107 : vector<8x16xf32> to vector<1x8x1x16xf32>
    tpu.vector_store %arg5[%c0_94, %c0_95, %c10, %c0_96], %110 {strides = array<i32>} : memref<1x8x16x16xf32, #tpu.memory_space<vmem>>, vector<1x8x1x16xf32>,
    %111 = vector.extract_strided_slice %66 {offsets = [0, 198], sizes = [8, 16], strides = [1, 1]} : vector<8x288xf32> to vector<8x16xf32>
    %c0_97 = arith.constant 0 : index
    %c0_98 = arith.constant 0 : index
    %c11 = arith.constant 11 : index
    %c0_99 = arith.constant 0 : index
    %112 = vector.load %arg5[%c0_97, %c0_98, %c11, %c0_99] : memref<1x8x16x16xf32, #tpu.memory_space<vmem>>, vector<1x8x1x16xf32>
    %113 = vector.shape_cast %112 : vector<1x8x1x16xf32> to vector<8x16xf32>
    %114 = vector.shape_cast %111 : vector<8x16xf32> to vector<1x8x1x16xf32>
    tpu.vector_store %arg5[%c0_97, %c0_98, %c11, %c0_99], %114 {strides = array<i32>} : memref<1x8x16x16xf32, #tpu.memory_space<vmem>>, vector<1x8x1x16xf32>,
    %115 = vector.extract_strided_slice %66 {offsets = [0, 216], sizes = [8, 16], strides = [1, 1]} : vector<8x288xf32> to vector<8x16xf32>
    %c0_100 = arith.constant 0 : index
    %c0_101 = arith.constant 0 : index
    %c12 = arith.constant 12 : index
    %c0_102 = arith.constant 0 : index
    %116 = vector.load %arg5[%c0_100, %c0_101, %c12, %c0_102] : memref<1x8x16x16xf32, #tpu.memory_space<vmem>>, vector<1x8x1x16xf32>
    %117 = vector.shape_cast %116 : vector<1x8x1x16xf32> to vector<8x16xf32>
    %118 = vector.shape_cast %115 : vector<8x16xf32> to vector<1x8x1x16xf32>
    tpu.vector_store %arg5[%c0_100, %c0_101, %c12, %c0_102], %118 {strides = array<i32>} : memref<1x8x16x16xf32, #tpu.memory_space<vmem>>, vector<1x8x1x16xf32>,
    %119 = vector.extract_strided_slice %66 {offsets = [0, 234], sizes = [8, 16], strides = [1, 1]} : vector<8x288xf32> to vector<8x16xf32>
    %c0_103 = arith.constant 0 : index
    %c0_104 = arith.constant 0 : index
    %c13 = arith.constant 13 : index
    %c0_105 = arith.constant 0 : index
    %120 = vector.load %arg5[%c0_103, %c0_104, %c13, %c0_105] : memref<1x8x16x16xf32, #tpu.memory_space<vmem>>, vector<1x8x1x16xf32>
    %121 = vector.shape_cast %120 : vector<1x8x1x16xf32> to vector<8x16xf32>
    %122 = vector.shape_cast %119 : vector<8x16xf32> to vector<1x8x1x16xf32>
    tpu.vector_store %arg5[%c0_103, %c0_104, %c13, %c0_105], %122 {strides = array<i32>} : memref<1x8x16x16xf32, #tpu.memory_space<vmem>>, vector<1x8x1x16xf32>,
    %123 = vector.extract_strided_slice %66 {offsets = [0, 252], sizes = [8, 16], strides = [1, 1]} : vector<8x288xf32> to vector<8x16xf32>
    %c0_106 = arith.constant 0 : index
    %c0_107 = arith.constant 0 : index
    %c14 = arith.constant 14 : index
    %c0_108 = arith.constant 0 : index
    %124 = vector.load %arg5[%c0_106, %c0_107, %c14, %c0_108] : memref<1x8x16x16xf32, #tpu.memory_space<vmem>>, vector<1x8x1x16xf32>
    %125 = vector.shape_cast %124 : vector<1x8x1x16xf32> to vector<8x16xf32>
    %126 = vector.shape_cast %123 : vector<8x16xf32> to vector<1x8x1x16xf32>
    tpu.vector_store %arg5[%c0_106, %c0_107, %c14, %c0_108], %126 {strides = array<i32>} : memref<1x8x16x16xf32, #tpu.memory_space<vmem>>, vector<1x8x1x16xf32>,
    %127 = vector.extract_strided_slice %66 {offsets = [0, 270], sizes = [8, 16], strides = [1, 1]} : vector<8x288xf32> to vector<8x16xf32>
    %c0_109 = arith.constant 0 : index
    %c0_110 = arith.constant 0 : index
    %c15 = arith.constant 15 : index
    %c0_111 = arith.constant 0 : index
    %128 = vector.load %arg5[%c0_109, %c0_110, %c15, %c0_111] : memref<1x8x16x16xf32, #tpu.memory_space<vmem>>, vector<1x8x1x16xf32>
    %129 = vector.shape_cast %128 : vector<1x8x1x16xf32> to vector<8x16xf32>
    %130 = vector.shape_cast %127 : vector<8x16xf32> to vector<1x8x1x16xf32>
    tpu.vector_store %arg5[%c0_109, %c0_110, %c15, %c0_111], %130 {strides = array<i32>} : memref<1x8x16x16xf32, #tpu.memory_space<vmem>>, vector<1x8x1x16xf32>,
    return
  }
  func.func @transform_0(%arg0: i32) -> (i32, i32, i32) {
    %c0_i32 = arith.constant 0 : i32
    %c0_i32_0 = arith.constant 0 : i32
    %c0_i32_1 = arith.constant 0 : i32
    return %arg0, %c0_i32, %c0_i32_0 : i32, i32, i32
  }
  func.func @transform_1(%arg0: i32) -> (i32, i32, i32) {
    %c0_i32 = arith.constant 0 : i32
    %c0_i32_0 = arith.constant 0 : i32
    %c0_i32_1 = arith.constant 0 : i32
    %c0_i32_2 = arith.constant 0 : i32
    return %c0_i32, %c0_i32_0, %c0_i32_1 : i32, i32, i32
  }
  func.func @transform_2(%arg0: i32) -> (i32, i32) {
    %c0_i32 = arith.constant 0 : i32
    %c0_i32_0 = arith.constant 0 : i32
    %c0_i32_1 = arith.constant 0 : i32
    return %c0_i32, %c0_i32_0 : i32, i32
  }
  func.func @transform_3(%arg0: i32) -> (i32, i32) {
    %c0_i32 = arith.constant 0 : i32
    %c0_i32_0 = arith.constant 0 : i32
    %c0_i32_1 = arith.constant 0 : i32
    return %c0_i32, %c0_i32_0 : i32, i32
  }
  func.func @transform_4(%arg0: i32) -> (i32, i32, i32, i32) {
    %c0_i32 = arith.constant 0 : i32
    %c0_i32_0 = arith.constant 0 : i32
    %c0_i32_1 = arith.constant 0 : i32
    %c0_i32_2 = arith.constant 0 : i32
    return %arg0, %c0_i32, %c0_i32_0, %c0_i32_1 : i32, i32, i32, i32
  }
}

</mosaic_0001>

<bundles_post_ra>
// kernel: conv_layer_forward.2
= control target key start
LH: loop header
LB: loop body
LE: loop exit
PB: predicated region body
PF: predicated region fallthrough
CT: control target
= control target key end

     0   :  { %s1654_s15 = smov 0   ;;  %s1844_s0 = inlined_call_operand.vmem [shape: bf16[2,4,384], index: 0, kind: input, shape index: {}]   ;;  %s1845_s1 = inlined_call_operand.vmem [shape: bf16[9,8,4], index: 1, kind: input, shape index: {}]   ;;  %s1846_s2 = inlined_call_operand.vmem [shape: f32[8,1], index: 2, kind: input, shape index: {}]   ;;  %s1847_s3 = inlined_call_operand.vmem [shape: f32[1,288], index: 3, kind: input, shape index: {}]   ;;  %s1848_s4 = inlined_call_operand.vmem [shape: f32[2,8,128], index: 4, kind: output, shape index: {}]  }
   0x1 LB: > { %s1399_s16 = sadd.s32 4294967295, %s1615_s15   ;;  %p1403_p0 = scmp.ge.s32.totalorder %s1615_s15, 1  ;;  %s1615_s15 = sphi %s1654_s15, %s14_s15  }
   0x2   : > { %p162_p1 = scmp.lt.s32.totalorder %s1615_s15, 3 }
   0x4   : > { %p163_p2 = pnand %p1403_p0, %p162_p1 }
   0x5   : > { %p187_p3 = scmp.lt.s32.totalorder (!%p163_p2), %s1399_s16, 1  ;;  %v208_v0 = vlaneseq (!%p163_p2)  ;;  %v1617_v1 = vmov (!%p163_p2), 1983009808   ;;  %v1618_v3 = vmov (!%p163_p2), 0.0   ;;  %vm1619_vm0 = vmmov (!%p163_p2), 0   ;;  %s1621_s21 = smov (!%p163_p2), 127  }
   0x6   : > { %166 = sbr.rel (%p163_p2) target bundleno = 607 (0x25f), region = 36  ;;  %v206_v2 = vunpack.c.l.s4 (!%p163_p2), %v1617_v1  ;;  %1461 = vmatprep.subr.bf16.mxu1 (!%p163_p2), %v1618_v3  ;;  %1463 = vmatprep.mubr.msk.bf16.mxu1 (!%p163_p2), %vm1619_vm0, %v1618_v3  ;;  %v1620_v6 = vmov (!%p163_p2), 0   ;;  %s1622_s22 = smov (!%p163_p2), 126   ;;  %v197_v48 = vld [vmem:[%s1846_s2] sm:$0xff] (!%p163_p2)  ;;  %vm233_vm1 = vcmask (!%p163_p2), 1041408   ;;  %vm226_vm2 = vcmask (!%p163_p2), 1039360  }
   0x7   : > { %v1665_v4 = vshrl.u32 (!%p163_p2), %v208_v0, 7  ;;  %275 = vmatprep.mubr.bf16.mxu0 (!%p163_p2), %v1620_v6  ;;  %1600 = vset.pattern.permute.xlu0 (!%p163_p2), %v1620_v6  ;;  %s1623_s23 = smov (!%p163_p2), 110   ;;  %s1624_s24 = smov (!%p163_p2), 109   ;;  %v1406_v53 = vld [vmem:[%s1845_s1 + $0x4] sm:$0xf] (!%p163_p2)  ;;  %vm229_vm3 = vcmask (!%p163_p2), 31744  }
   0x8   : > { %v207_v5 = vunpack.c.0.s8 (!%p163_p2), %v206_v2  ;;  %s1625_s25 = smov (!%p163_p2), 108   ;;  %s1626_s26 = smov (!%p163_p2), 92   ;;  %vm443_vm4 = vcmask (!%p163_p2), 1031168   ;;  %v200_v0 = vld [vmem:[%s1845_s1] sm:$0xf] (!%p163_p2)  ;;  %vm568_vm5 = vcmask (!%p163_p2), 900096  }
   0x9   : > { %s1627_s27 = smov (!%p163_p2), 91   ;;  %s1628_s28 = smov (!%p163_p2), 90   ;;  %vm693_vm6 = vcmask (!%p163_p2), 891904   ;;  %vm818_vm7 = vcmask (!%p163_p2), 883712   ;;  %vm943_vm8 = vcmask (!%p163_p2), 752640   ;;  %vm1068_vm9 = vcmask (!%p163_p2), 744448  }
   0xa   : > { %v1673_v7 = vsub.s32 (!%p163_p2), %v207_v5, %v1665_v4  ;;  %vm1193_vm10 = vcmask (!%p163_p2), 736256   ;;  %vm1326_vm14 = vcmask (!%p163_p2), 261120   ;;  %vm1342_vm15 = vcmask (!%p163_p2), 7168  }
   0xd   : > { %s1850_s16 = smov (!%p187_p3, %s1399_s16), 1 }
   0xe   : > { %s1579_s17 = smul.u32 6, %s1850_s16 }
  0x10   : > { %s1678_s20 = scalar_lea.vmem %s1844_s0, %s1579_s17 }
  0x11   : > { %v199_v8 = vld [vmem:[%s1678_s20] sm:$0x3f] }
  0x12   : > { %v1682_v9 = vrot.slane %v199_v8, %v1673_v7  ;;  %v204_v10 = vcombine.high %v199_v8, %v199_v8  ;;  %v417_v11 = vld [vmem:[%s1678_s20] sm:$0x3f] }
  0x13   : > { %v428_v14 = vrot.slane %v417_v11, %v1673_v7  ;;  %v421_v15 = vcombine.high %v417_v11, %v417_v11  ;;  %v542_v17 = vld [vmem:[%s1678_s20] sm:$0x3f]  ;;  %v1413_v11 = vld [vmem:[%s1845_s1 + $0x8] sm:$0xf] }
  0x14   : > { %220 = vrot.lane.b32.xlu0 %v1682_v9, %s1621_s21  ;;  %v1687_v12 = vrot.slane %v204_v10, %v1673_v7  ;;  %v1691_v13 = vcombine.high %v1682_v9, %v1682_v9  ;;  %v553_v19 = vrot.slane %v542_v17, %v1673_v7  ;;  %v546_v20 = vcombine.high %v542_v17, %v542_v17  ;;  %v667_v22 = vld [vmem:[%s1678_s20] sm:$0x3f] }
  0x15   : > { %v436_v16 = vcombine.high %v428_v14, %v428_v14  ;;  %v435_v18 = vrot.slane %v421_v15, %v1673_v7  ;;  %v678_v24 = vrot.slane %v667_v22, %v1673_v7  ;;  %v671_v25 = vcombine.high %v667_v22, %v667_v22  ;;  %v792_v27 = vld [vmem:[%s1678_s20] sm:$0x3f] }
  0x16   : > { %224 = vrot.lane.b32.xlu1 %v1687_v12, %s1621_s21  ;;  %v561_v21 = vcombine.high %v553_v19, %v553_v19  ;;  %v560_v23 = vrot.slane %v546_v20, %v1673_v7  ;;  %v803_v29 = vrot.slane %v792_v27, %v1673_v7  ;;  %v796_v30 = vcombine.high %v792_v27, %v792_v27  ;;  %v917_v32 = vld [vmem:[%s1678_s20] sm:$0x3f]  ;;  %v1421_v27 = vld [vmem:[%s1845_s1 + $0x10] sm:$0xf] }
  0x17   : > { %v686_v26 = vcombine.high %v678_v24, %v678_v24  ;;  %v685_v28 = vrot.slane %v671_v25, %v1673_v7  ;;  %v928_v34 = vrot.slane %v917_v32, %v1673_v7  ;;  %v921_v35 = vcombine.high %v917_v32, %v917_v32  ;;  %v1042_v37 = vld [vmem:[%s1678_s20] sm:$0x3f] }
  0x18   : > { %222 = vrot.lane.b32.xlu0 %v1691_v13, %s1621_s21  ;;  %v811_v31 = vcombine.high %v803_v29, %v803_v29  ;;  %v810_v33 = vrot.slane %v796_v30, %v1673_v7  ;;  %v1053_v39 = vrot.slane %v1042_v37, %v1673_v7  ;;  %v1046_v40 = vcombine.high %v1042_v37, %v1042_v37  ;;  %v1167_v42 = vld [vmem:[%s1678_s20] sm:$0x3f] }
  0x19   : > { %v936_v36 = vcombine.high %v928_v34, %v928_v34  ;;  %v935_v38 = vrot.slane %v921_v35, %v1673_v7  ;;  %v1178_v44 = vrot.slane %v1167_v42, %v1673_v7  ;;  %v1171_v45 = vcombine.high %v1167_v42, %v1167_v42  ;;  %v1425_v35 = vld [vmem:[%s1845_s1 + $0x14] sm:$0xf] }
  0x1a   : > { %437 = vrot.lane.b32.xlu1 %v428_v14, %s1622_s22  ;;  %v1061_v41 = vcombine.high %v1053_v39, %v1053_v39  ;;  %v1060_v43 = vrot.slane %v1046_v40, %v1673_v7  ;;  %v334_v56 = vsel %vm233_vm1, %v1687_v12, 0  ;;  %v328_v59 = vsel %vm233_vm1, %v1682_v9, 0 }
  0x1b   : > { %v1186_v46 = vcombine.high %v1178_v44, %v1178_v44  ;;  %v1185_v47 = vrot.slane %v1171_v45, %v1673_v7 }
  0x1c   : > { %439 = vrot.lane.b32.xlu0 %v436_v16, %s1622_s22 }
  0x1e   : > { %441 = vrot.lane.b32.xlu1 %v435_v18, %s1622_s22 }
  0x20   : > { %562 = vrot.lane.b32.xlu0 %v553_v19, %s1623_s23  ;;  %v1417_v19 = vld [vmem:[%s1845_s1 + $0xc] sm:$0xf] }
  0x22   : > { %564 = vrot.lane.b32.xlu1 %v561_v21, %s1623_s23 }
  0x24   : > { %566 = vrot.lane.b32.xlu0 %v560_v23, %s1623_s23 }
  0x26   : > { %687 = vrot.lane.b32.xlu1 %v678_v24, %s1624_s24 }
  0x28   : > { %689 = vrot.lane.b32.xlu0 %v686_v26, %s1624_s24 }
  0x2a   : > { %691 = vrot.lane.b32.xlu1 %v685_v28, %s1624_s24 }
  0x2c   : > { %812 = vrot.lane.b32.xlu0 %v803_v29, %s1625_s25 }
  0x2e   : > { %814 = vrot.lane.b32.xlu1 %v811_v31, %s1625_s25 }
  0x30   : > { %816 = vrot.lane.b32.xlu0 %v810_v33, %s1625_s25  ;;  %s1405_s25 = sshll.u32 %s1850_s16, 3 }
  0x32   : > { %937 = vrot.lane.b32.xlu1 %v928_v34, %s1626_s26 }
  0x34   : > { %939 = vrot.lane.b32.xlu0 %v936_v36, %s1626_s26 }
  0x36   : > { %941 = vrot.lane.b32.xlu1 %v935_v38, %s1626_s26 }
  0x38   : > { %1062 = vrot.lane.b32.xlu0 %v1053_v39, %s1627_s27 }
  0x3a   : > { %1064 = vrot.lane.b32.xlu1 %v1061_v41, %s1627_s27 }
  0x3c   : > { %1066 = vrot.lane.b32.xlu0 %v1060_v43, %s1627_s27  ;;  %v1429_v43 = vld [vmem:[%s1845_s1 + $0x18] sm:$0xf] }
  0x3e   : > { %1187 = vrot.lane.b32.xlu1 %v1178_v44, %s1628_s28 }
  0x40   : > { %1189 = vrot.lane.b32.xlu0 %v1186_v46, %s1628_s28 }
  0x42   : > { %1191 = vrot.lane.b32.xlu1 %v1185_v47, %s1628_s28  ;;  %s1829_s28 = scalar_lea.vmem %s1848_s4, %s1405_s25 }
  0x43   : > { %1341 = vst [vmem:[%s1829_s28] sm:$0xff] %v1618_v3 }
  0x44   : > { %1297 = vperm.xlu0 %1600, %v197_v48  }
  0x86   : > { %v221_v49 = vpop.permute.xlu0 %220 }
  0x88   : > { %v225_v50 = vpop.permute.xlu1 %224 }
  0x89   : > { %v241_v51 = vsel %vm233_vm1, %v225_v50, 0 }
  0x8a   : > { %v223_v52 = vpop.permute.xlu0 %222  ;;  %1462 = vmatpush3.bf16.msra.mxu1 %v241_v51 }
  0x8b   : > { %v228_v54 = vsel %vm226_vm2, %v223_v52, %v225_v50  ;;  %v227_v55 = vsel %vm226_vm2, %v221_v49, %v223_v52  ;;  %1467 = vmatprep.subr.bf16.mxu1 %v1618_v3  ;;  %v1433_v50 = vld [vmem:[%s1845_s1 + $0x1c] sm:$0xf] }
  0x8c   : > { %1407 = vmatprep.subr.msk.bf16.mxu0 %vm233_vm1, %v228_v54  ;;  %v235_v57 = vsel %vm233_vm1, %v227_v55, 0  ;;  %v438_v58 = vpop.permute.xlu1 %437  ;;  %v1437_v54 = vld [vmem:[%s1845_s1 + $0x20] sm:$0xf]  ;;  %v1317_v55 = vsub.s32 2, %v1665_v4 }
  0x8d   : > { %244 = vmatpush1.bf16.msra.mxu0 %v235_v57  ;;  %1464 = vmatmul.mubr.msk.bf16.vlgmr.msra.gmra.mrb[0].mxu1 %vm229_vm3, %v1406_v53  ;;  %v1309_v57 = vsub.s32 0, %v1665_v4 }
  0x8e   : > { %1410 = vmatprep.subr.msk.bf16.mxu0 %vm233_vm1, %v1691_v13  ;;  %1468 = vmatpush3.bf16.msra.mxu1 %v334_v56  ;;  %v440_v60 = vpop.permute.xlu0 %439  ;;  %v198_v56 = vld [vmem:[%s1847_s3] sm:$0x7] }
  0x8f   : > { %1469 = vmatprep.mubr.msk.bf16.mxu1 %vm1619_vm0, %v1618_v3  ;;  %1473 = vmatprep.subr.bf16.mxu1 %v1618_v3  ;;  %v444_v1 = vsel %vm443_vm4, %v438_v58, %v440_v60 }
  0x90   : > { %1408 = vmatmul.mubr.msk.bf16.vlgmr.msra.gmra.mrb[0].mxu0 %vm229_vm3, %v1406_v53  ;;  %v442_v61 = vpop.permute.xlu1 %441  ;;  %v450_v8 = vsel %vm233_vm1, %v444_v1, 0 }
  0x91   : > { %337 = vmatpush1.bf16.msra.mxu0 %v328_v59  ;;  %v445_v62 = vsel %vm443_vm4, %v440_v60, %v442_v61  ;;  %368 = vmatprep.mubr.bf16.mxu0 %v1620_v6  ;;  %v456_v2 = vsel %vm233_vm1, %v442_v61, 0  ;;  %v1313_v59 = vsub.s32 1, %v1665_v4 }
  0x92   : > { %1414 = vmatprep.subr.msk.bf16.mxu0 %vm233_vm1, %v445_v62  ;;  %v563_v63 = vpop.permute.xlu0 %562  ;;  %v1318_v62 = vrot.slane %v198_v56, %v1317_v55 }
  0x94   : > { %v565_v5 = vpop.permute.xlu1 %564 }
  0x95   : > { %v569_v12 = vsel %vm568_vm5, %v563_v63, %v565_v5 }
  0x96   : > { %v567_v7 = vpop.permute.xlu0 %566  ;;  %v575_v16 = vsel %vm233_vm1, %v569_v12, 0 }
  0x97   : > { %v570_v9 = vsel %vm568_vm5, %v565_v5, %v567_v7  ;;  %v581_v13 = vsel %vm233_vm1, %v567_v7, 0 }
  0x98   : > { %v688_v10 = vpop.permute.xlu1 %687 }
  0x99   : > { %1470 = vmatmul.mubr.msk.bf16.vlgmr.msra.gmra.mrb[0].mxu1 %vm229_vm3, %v200_v0 }
  0x9a   : > { %1474 = vmatpush3.bf16.msra.mxu1 %v456_v2  ;;  %1475 = vmatprep.mubr.msk.bf16.mxu1 %vm1619_vm0, %v1618_v3  ;;  %v690_v14 = vpop.permute.xlu0 %689 }
  0x9b   : > { %1479 = vmatprep.subr.bf16.mxu1 %v1618_v3  ;;  %v694_v20 = vsel %vm693_vm6, %v688_v10, %v690_v14 }
  0x9c   : > { %1411 = vmatmul.mubr.msk.bf16.vlgmr.msra.gmra.mrb[0].mxu0 %vm229_vm3, %v200_v0  ;;  %v692_v15 = vpop.permute.xlu1 %691  ;;  %v700_v24 = vsel %vm233_vm1, %v694_v20, 0 }
  0x9d   : > { %459 = vmatpush1.bf16.msra.mxu0 %v450_v8  ;;  %490 = vmatprep.mubr.bf16.mxu0 %v1620_v6  ;;  %v695_v17 = vsel %vm693_vm6, %v690_v14, %v692_v15  ;;  %v706_v21 = vsel %vm233_vm1, %v692_v15, 0  ;;  %v1314_v8 = vrot.slane %v198_v56, %v1313_v59 }
  0x9e   : > { %1418 = vmatprep.subr.msk.bf16.mxu0 %vm233_vm1, %v570_v9  ;;  %v813_v18 = vpop.permute.xlu0 %812 }
  0xa0   : > { %v815_v22 = vpop.permute.xlu1 %814 }
  0xa1   : > { %v819_v28 = vsel %vm818_vm7, %v813_v18, %v815_v22 }
  0xa2   : > { %v817_v23 = vpop.permute.xlu0 %816  ;;  %v825_v32 = vsel %vm233_vm1, %v819_v28, 0 }
  0xa3   : > { %v820_v25 = vsel %vm818_vm7, %v815_v22, %v817_v23  ;;  %v831_v29 = vsel %vm233_vm1, %v817_v23, 0 }
  0xa4   : > { %v938_v26 = vpop.permute.xlu1 %937 }
  0xa5   : > { %1476 = vmatmul.mubr.msk.bf16.vlgmr.msra.gmra.mrb[0].mxu1 %vm229_vm3, %v1413_v11 }
  0xa6   : > { %1480 = vmatpush3.bf16.msra.mxu1 %v581_v13  ;;  %1481 = vmatprep.mubr.msk.bf16.mxu1 %vm1619_vm0, %v1618_v3  ;;  %v940_v30 = vpop.permute.xlu0 %939 }
  0xa7   : > { %1485 = vmatprep.subr.bf16.mxu1 %v1618_v3  ;;  %v944_v36 = vsel %vm943_vm8, %v938_v26, %v940_v30 }
  0xa8   : > { %1415 = vmatmul.mubr.msk.bf16.vlgmr.msra.gmra.mrb[0].mxu0 %vm229_vm3, %v1413_v11  ;;  %v942_v31 = vpop.permute.xlu1 %941  ;;  %v950_v40 = vsel %vm233_vm1, %v944_v36, 0 }
  0xa9   : > { %584 = vmatpush1.bf16.msra.mxu0 %v575_v16  ;;  %615 = vmatprep.mubr.bf16.mxu0 %v1620_v6  ;;  %v945_v33 = vsel %vm943_vm8, %v940_v30, %v942_v31  ;;  %v956_v37 = vsel %vm233_vm1, %v942_v31, 0 }
  0xaa   : > { %1422 = vmatprep.subr.msk.bf16.mxu0 %vm233_vm1, %v695_v17  ;;  %v1063_v34 = vpop.permute.xlu0 %1062 }
  0xac   : > { %v1065_v38 = vpop.permute.xlu1 %1064 }
  0xad   : > { %v1069_v44 = vsel %vm1068_vm9, %v1063_v34, %v1065_v38 }
  0xae   : > { %v1067_v39 = vpop.permute.xlu0 %1066  ;;  %v1075_v48 = vsel %vm233_vm1, %v1069_v44, 0 }
  0xaf   : > { %v1070_v41 = vsel %vm1068_vm9, %v1065_v38, %v1067_v39  ;;  %v1081_v45 = vsel %vm233_vm1, %v1067_v39, 0 }
  0xb0   : > { %v1188_v42 = vpop.permute.xlu1 %1187 }
  0xb1   : > { %1482 = vmatmul.mubr.msk.bf16.vlgmr.msra.gmra.mrb[0].mxu1 %vm229_vm3, %v1417_v19 }
  0xb2   : > { %1486 = vmatpush3.bf16.msra.mxu1 %v706_v21  ;;  %1487 = vmatprep.mubr.msk.bf16.mxu1 %vm1619_vm0, %v1618_v3  ;;  %v1190_v46 = vpop.permute.xlu0 %1189 }
  0xb3   : > { %1491 = vmatprep.subr.bf16.mxu1 %v1618_v3  ;;  %v1194_v51 = vsel %vm1193_vm10, %v1188_v42, %v1190_v46 }
  0xb4   : > { %1419 = vmatmul.mubr.msk.bf16.vlgmr.msra.gmra.mrb[0].mxu0 %vm229_vm3, %v1417_v19  ;;  %v1192_v47 = vpop.permute.xlu1 %1191  ;;  %v1200_v53 = vsel %vm233_vm1, %v1194_v51, 0 }
  0xb5   : > { %709 = vmatpush1.bf16.msra.mxu0 %v700_v24  ;;  %740 = vmatprep.mubr.bf16.mxu0 %v1620_v6  ;;  %v1195_v49 = vsel %vm1193_vm10, %v1190_v46, %v1192_v47  ;;  %v1206_v52 = vsel %vm233_vm1, %v1192_v47, 0 }
  0xb6   : > { %1426 = vmatprep.subr.msk.bf16.mxu0 %vm233_vm1, %v820_v25 }
  0xbd   : > { %1488 = vmatmul.mubr.msk.bf16.vlgmr.msra.gmra.mrb[0].mxu1 %vm229_vm3, %v1421_v27 }
  0xbe   : > { %1492 = vmatpush3.bf16.msra.mxu1 %v831_v29  ;;  %1493 = vmatprep.mubr.msk.bf16.mxu1 %vm1619_vm0, %v1618_v3 }
  0xbf   : > { %1497 = vmatprep.subr.bf16.mxu1 %v1618_v3 }
  0xc0   : > { %1423 = vmatmul.mubr.msk.bf16.vlgmr.msra.gmra.mrb[0].mxu0 %vm229_vm3, %v1421_v27 }
  0xc1   : > { %834 = vmatpush1.bf16.msra.mxu0 %v825_v32  ;;  %865 = vmatprep.mubr.bf16.mxu0 %v1620_v6 }
  0xc2   : > { %1430 = vmatprep.subr.msk.bf16.mxu0 %vm233_vm1, %v945_v33 }
  0xc9   : > { %1494 = vmatmul.mubr.msk.bf16.vlgmr.msra.gmra.mrb[0].mxu1 %vm229_vm3, %v1425_v35 }
  0xca   : > { %1498 = vmatpush3.bf16.msra.mxu1 %v956_v37  ;;  %1499 = vmatprep.mubr.msk.bf16.mxu1 %vm1619_vm0, %v1618_v3 }
  0xcb   : > { %1503 = vmatprep.subr.bf16.mxu1 %v1618_v3 }
  0xcc   : > { %1427 = vmatmul.mubr.msk.bf16.vlgmr.msra.gmra.mrb[0].mxu0 %vm229_vm3, %v1425_v35 }
  0xcd   : > { %959 = vmatpush1.bf16.msra.mxu0 %v950_v40  ;;  %990 = vmatprep.mubr.bf16.mxu0 %v1620_v6 }
  0xce   : > { %1434 = vmatprep.subr.msk.bf16.mxu0 %vm233_vm1, %v1070_v41 }
  0xd5   : > { %1500 = vmatmul.mubr.msk.bf16.vlgmr.msra.gmra.mrb[0].mxu1 %vm229_vm3, %v1429_v43 }
  0xd6   : > { %1504 = vmatpush3.bf16.msra.mxu1 %v1081_v45  ;;  %1505 = vmatprep.mubr.msk.bf16.mxu1 %vm1619_vm0, %v1618_v3 }
  0xd7   : > { %1509 = vmatprep.subr.bf16.mxu1 %v1618_v3 }
  0xd8   : > { %1431 = vmatmul.mubr.msk.bf16.vlgmr.msra.gmra.mrb[0].mxu0 %vm229_vm3, %v1429_v43 }
  0xd9   : > { %1084 = vmatpush1.bf16.msra.mxu0 %v1075_v48  ;;  %1115 = vmatprep.mubr.bf16.mxu0 %v1620_v6 }
  0xda   : > { %1438 = vmatprep.subr.msk.bf16.mxu0 %vm233_vm1, %v1195_v49 }
  0xe1   : > { %1506 = vmatmul.mubr.msk.bf16.vlgmr.msra.gmra.mrb[0].mxu1 %vm229_vm3, %v1433_v50 }
  0xe2   : > { %1510 = vmatpush3.bf16.msra.mxu1 %v1206_v52  ;;  %1511 = vmatprep.mubr.msk.bf16.mxu1 %vm1619_vm0, %v1618_v3  ;;  %v1310_v3 = vrot.slane %v198_v56, %v1309_v57  ;;  %vm1344_vm0 = vcmask 15368  }
  0xe4   : > { %1435 = vmatmul.mubr.msk.bf16.vlgmr.msra.gmra.mrb[0].mxu0 %vm229_vm3, %v1433_v50 }
  0xe5   : > { %1209 = vmatpush1.bf16.msra.mxu0 %v1200_v53  ;;  %1240 = vmatprep.mubr.bf16.mxu0 %v1620_v6  ;;  %v1298_v6 = vpop.permute.xlu0 %1297 }
  0xed   : > { %1512 = vmatmul.mubr.msk.bf16.vlgmr.msra.gmra.mrb[0].mxu1 %vm229_vm3, %v1437_v54 }
  0xf0   : > { %1439 = vmatmul.mubr.msk.bf16.vlgmr.msra.gmra.mrb[0].mxu0 %vm229_vm3, %v1437_v54 }
 0x1c0   : > { %v1283_v58 = vpop.f32.mrb[0].mxu1 }
 0x1c1   : > { %vm1294_vm11 = vcmp.ge.f32.partialorder %v1283_v58, 0.0  ;;  %v1302_v60 = vmul.f32 %v1298_v6, %v1283_v58  ;;  %v1513_v61 = vpop.f32.mrb[1].mxu1 }
 0x1c2   : > { %v1286_v63 = vpop.f32.mrb[2].mxu1 }
 0x1c3   : > { %v1305_v0 = vsel %vm1294_vm11, %v1283_v58, %v1302_v60  ;;  %v1242_v1 = vpop.f32.mrb[0].mxu0  ;;  %v1514_v2 = vpop.f32.mrb[3].mxu1 }
 0x1c4   : > { %vm1292_vm12 = vcmp.ge.f32.partialorder %v1242_v1, 0.0  ;;  %v1300_v5 = vmul.f32 %v1298_v6, %v1242_v1  ;;  %v1244_v7 = vpop.f32.mrb[1].mxu0  ;;  %v1324_v11 = vmul.f32 %v1318_v62, %v1305_v0 }
 0x1c5   : > { %vm1293_vm13 = vcmp.ge.f32.partialorder %v1244_v7, 0.0  ;;  %v1301_v9 = vmul.f32 %v1298_v6, %v1244_v7  ;;  %v1246_v10 = vpop.f32.mrb[2].mxu0 }
 0x1c6   : > { %v1303_v12 = vsel %vm1292_vm12, %v1242_v1, %v1300_v5  ;;  %v1247_v13 = vpop.f32.mrb[3].mxu0  ;;  %v1334_v17 = vmul.f32 %v1324_v11, %v1305_v0  ;;  %v1327_v20 = vsel %vm1326_vm14, %v1324_v11, 0.0 }
 0x1c7   : > { %v1322_v4 = vmul.f32 %v1310_v3, %v1303_v12  ;;  %v1304_v14 = vsel %vm1293_vm13, %v1244_v7, %v1301_v9 }
 0x1c8   : > { %v1323_v15 = vmul.f32 %v1314_v8, %v1304_v14  ;;  %v1336_v23 = vsel %vm1326_vm14, %v1334_v17, 0.0 }
 0x1c9   : > { %v1332_v16 = vmul.f32 %v1322_v4, %v1303_v12 }
 0x1ca   : > { %v1333_v18 = vmul.f32 %v1323_v15, %v1304_v14  ;;  %v1325_v19 = vadd.f32 %v1323_v15, %v1322_v4 }
 0x1cc   : > { %v1328_v21 = vadd.f32 %v1327_v20, %v1325_v19  ;;  %v1335_v22 = vadd.f32 %v1333_v18, %v1332_v16 }
 0x1ce   : > { %1329 = vadd.xlane.f32.xlu1 %v1328_v21  ;;  %v1337_v24 = vadd.f32 %v1336_v23, %v1335_v22 }
 0x1d0   : > { %1338 = vadd.xlane.f32.xlu0 %v1337_v24 }
 0x25b   : > { %v1330_v25 = vpop.xlane.xlu1 %1329 }
 0x25c   : > { %1343 = vst.msk [vmem:[%s1829_s28] sm:$0xff] %vm1342_vm15, %v1330_v25 }
 0x25d   : > { %v1339_v26 = vpop.xlane.xlu0 %1338 }
 0x25e   : > { %1345 = vst.msk [vmem:[%s1829_s28] sm:$0xff] %vm1344_vm0, %v1339_v26 }
 0x25f PF: > { %s14_s15 = sadd.s32 1, %s1615_s15  }
 0x260   : > { %p11_p4 = scmp.ge.s32.totalorder %s14_s15, 4  }
 0x262   :  { %13 = sbr.rel (!%p11_p4) target bundleno = 1 (0x1), region = 74 }

// kernel: conv_layer_forward.3
= control target key start
LH: loop header
LB: loop body
LE: loop exit
PB: predicated region body
PF: predicated region fallthrough
CT: control target
= control target key end

     0   :  { %9 = vsyncpa [#allocation3], 0  ;;  %s3945_s0 = inlined_call_operand.vmem [shape: bf16[2,4,384], index: 0, kind: input, shape index: {}]   ;;  %s3946_s1 = inlined_call_operand.vmem [shape: bf16[9,8,4], index: 1, kind: input, shape index: {}]   ;;  %s3947_s2 = inlined_call_operand.vmem [shape: f32[8,1], index: 2, kind: input, shape index: {}]   ;;  %s3948_s3 = inlined_call_operand.vmem [shape: f32[8,2], index: 3, kind: input, shape index: {}]   ;;  %s3949_s4 = inlined_call_operand.hbm [shape: f32[2,8,16,16], index: 4, kind: output, shape index: {}]  }
   0x1   :  { %11 = vsyncpa [#allocation3 + $0x1], 0  ;;  %s2800_s15 = smov 0   ;;  %s2802_s16 = smov 0  }
   0x2   :  { %s2804_s17 = smov 0   ;;  %s2806_s18 = smov 0  }
   0x3 LB: > { %s2821_s19 = sadd.s32 4294967295, %s2743_s18   ;;  %s2417_s20 = sadd.s32 4294967294, %s2743_s18   ;;  %s2743_s18 = sphi %s2806_s18, %s3961_s18   ;;  %s2739_s17 = sphi %s2804_s17, %s3960_s17   ;;  %s2735_s16 = sphi %s2802_s16, %s3959_s16   ;;  %s2731_s15 = sphi %s2800_s15, %s3958_s15  }
   0x4   : > { %s2825_s21 = sadd.s32 1, %s2743_s18   ;;  %s113_s22 = sadd.s32 1, %s2739_s17 }
   0x5   : > { %s110_s23 = ssub.s32 %s2743_s18, %s2825_s21  ;;  %p123_p0 = scmp.ne.s32.totalorder %s2739_s17, %s2735_s16 }
   0x6   : > { %p111_p1 = scmp.eq.s32.totalorder %s110_s23, 0  ;;  %p124_p2 = scmp.eq.s32.totalorder %s2821_s19, 1 }
   0x7   : > { %p129_p3 = scmp.ne.s32.totalorder %s2735_s16, %s2731_s15  ;;  %p130_p4 = scmp.eq.s32.totalorder %s2417_s20, 1 }
   0x8   : > { %s2836_s24 = scalar_select %p111_p1, %s2739_s17, %s113_s22  }
   0x9   : > { %p2838_p5 = por %p124_p2, %p123_p0  ;;  %p2842_p6 = por %p130_p4, %p129_p3 }
   0xa   : > { %p2420_p7 = scmp.ge.s32.totalorder %s2743_s18, 1  ;;  %p165_p8 = scmp.lt.s32.totalorder %s2743_s18, 3 }
   0xc   : > { %p166_p9 = pnand %p2420_p7, %p165_p8 }
   0xd   : > { %p191_p10 = scmp.lt.s32.totalorder (!%p166_p9), %s2821_s19, 1  ;;  %v208_v0 = vlaneseq (!%p166_p9)  ;;  %v2745_v1 = vmov (!%p166_p9), 1983009808   ;;  %v2746_v4 = vmov (!%p166_p9), 0.0   ;;  %vm2747_vm0 = vmmov (!%p166_p9), 0   ;;  %s2749_s6 = smov (!%p166_p9), 127  }
   0xe   : > { %169 = sbr.rel (%p166_p9) target bundleno = 871 (0x367), region = 36  ;;  %v206_v2 = vunpack.c.l.s4 (!%p166_p9), %v2745_v1  ;;  %2482 = vmatprep.subr.bf16.mxu1 (!%p166_p9), %v2746_v4  ;;  %2484 = vmatprep.mubr.msk.bf16.mxu1 (!%p166_p9), %vm2747_vm0, %v2746_v4  ;;  %v2748_v7 = vmov (!%p166_p9), 0   ;;  %s2750_s7 = smov (!%p166_p9), 126   ;;  %v197_v48 = vld [vmem:[%s3947_s2] sm:$0xff] (!%p166_p9)  ;;  %v2757_v50 = vmov (!%p166_p9), 1   ;;  %vm233_vm1 = vcmask (!%p166_p9), 1041408  }
   0xf   : > { %v2850_v3 = vshrl.u32 (!%p166_p9), %v208_v0, 7  ;;  %275 = vmatprep.mubr.bf16.mxu0 (!%p166_p9), %v2748_v7  ;;  %2670 = vset.pattern.permute.xlu1 (!%p166_p9), %v2748_v7  ;;  %s2751_s8 = smov (!%p166_p9), 110   ;;  %s2752_s9 = smov (!%p166_p9), 109   ;;  %v198_v49 = vld [vmem:[%s3948_s3] sm:$0xff] (!%p166_p9)  ;;  %vm226_vm2 = vcmask (!%p166_p9), 1039360   ;;  %vm229_vm3 = vcmask (!%p166_p9), 31744  }
  0x10   : > { %v207_v5 = vunpack.c.0.s8 (!%p166_p9), %v206_v2  ;;  %2669 = vset.pattern.permute.xlu0 (!%p166_p9), %v2748_v7  ;;  %s2753_s10 = smov (!%p166_p9), 108   ;;  %s2754_s11 = smov (!%p166_p9), 92   ;;  %v2423_v55 = vld [vmem:[%s3946_s1 + $0x4] sm:$0xf] (!%p166_p9)  ;;  %vm443_vm4 = vcmask (!%p166_p9), 1031168   ;;  %vm568_vm5 = vcmask (!%p166_p9), 900096  }
  0x11   : > { %s2755_s12 = smov (!%p166_p9), 91   ;;  %s2756_s13 = smov (!%p166_p9), 90   ;;  %v200_v2 = vld [vmem:[%s3946_s1] sm:$0xf] (!%p166_p9)  ;;  %vm693_vm6 = vcmask (!%p166_p9), 891904   ;;  %vm818_vm7 = vcmask (!%p166_p9), 883712  }
  0x12   : > { %v2856_v6 = vsub.s32 (!%p166_p9), %v207_v5, %v2850_v3  ;;  %vm943_vm8 = vcmask (!%p166_p9), 752640   ;;  %vm1068_vm9 = vcmask (!%p166_p9), 744448   ;;  %vm1193_vm10 = vcmask (!%p166_p9), 736256   ;;  %s188_s30 = sand.u32 (!%p166_p9), 1, %s2735_s16   ;;  %s2764_s14 = smov (!%p166_p9), 112  }
  0x13   : > { %vm1379_vm14 = vcmask (!%p166_p9), 122880   ;;  %s2765_s20 = smov (!%p166_p9), 2   ;;  %s2766_s22 = smov (!%p166_p9), 94   ;;  %vm1759_vm15 = vcmask (!%p166_p9), 15360  }
  0x14   : > { %s2767_s23 = smov (!%p166_p9), 76   ;;  %s2770_s29 = smov (!%p166_p9), 22  }
  0x15   : > { %s192_s27 = scalar_select %p191_p10, %s2821_s19, 1 }
  0x17   : > { %s2600_s28 = smul.u32 6, %s192_s27  ;;  %s2768_s27 = smov 58  }
  0x19   : > { %s2863_s5 = scalar_lea.vmem %s3945_s0, %s2600_s28  ;;  %s2769_s28 = smov 40  }
  0x1a   : > { %v199_v8 = vld [vmem:[%s2863_s5] sm:$0x3f] }
  0x1b   : > { %v2868_v9 = vrot.slane %v199_v8, %v2856_v6  ;;  %v204_v10 = vcombine.high %v199_v8, %v199_v8  ;;  %v417_v11 = vld [vmem:[%s2863_s5] sm:$0x3f] }
  0x1c   : > { %v428_v14 = vrot.slane %v417_v11, %v2856_v6  ;;  %v421_v15 = vcombine.high %v417_v11, %v417_v11  ;;  %v542_v17 = vld [vmem:[%s2863_s5] sm:$0x3f] }
  0x1d   : > { %220 = vrot.lane.b32.xlu0 %v2868_v9, %s2749_s6  ;;  %v2873_v12 = vrot.slane %v204_v10, %v2856_v6  ;;  %v2877_v13 = vcombine.high %v2868_v9, %v2868_v9  ;;  %v553_v19 = vrot.slane %v542_v17, %v2856_v6  ;;  %v546_v20 = vcombine.high %v542_v17, %v542_v17  ;;  %v667_v22 = vld [vmem:[%s2863_s5] sm:$0x3f] }
  0x1e   : > { %v436_v16 = vcombine.high %v428_v14, %v428_v14  ;;  %v435_v18 = vrot.slane %v421_v15, %v2856_v6  ;;  %v678_v24 = vrot.slane %v667_v22, %v2856_v6  ;;  %v671_v25 = vcombine.high %v667_v22, %v667_v22  ;;  %v792_v27 = vld [vmem:[%s2863_s5] sm:$0x3f] }
  0x1f   : > { %224 = vrot.lane.b32.xlu1 %v2873_v12, %s2749_s6  ;;  %v561_v21 = vcombine.high %v553_v19, %v553_v19  ;;  %v560_v23 = vrot.slane %v546_v20, %v2856_v6  ;;  %v803_v29 = vrot.slane %v792_v27, %v2856_v6  ;;  %v796_v30 = vcombine.high %v792_v27, %v792_v27  ;;  %v917_v32 = vld [vmem:[%s2863_s5] sm:$0x3f] }
  0x20   : > { %v686_v26 = vcombine.high %v678_v24, %v678_v24  ;;  %v685_v28 = vrot.slane %v671_v25, %v2856_v6  ;;  %v928_v34 = vrot.slane %v917_v32, %v2856_v6  ;;  %v921_v35 = vcombine.high %v917_v32, %v917_v32  ;;  %v1042_v37 = vld [vmem:[%s2863_s5] sm:$0x3f] }
  0x21   : > { %222 = vrot.lane.b32.xlu0 %v2877_v13, %s2749_s6  ;;  %v811_v31 = vcombine.high %v803_v29, %v803_v29  ;;  %v810_v33 = vrot.slane %v796_v30, %v2856_v6  ;;  %v1053_v39 = vrot.slane %v1042_v37, %v2856_v6  ;;  %v1046_v40 = vcombine.high %v1042_v37, %v1042_v37  ;;  %v1167_v42 = vld [vmem:[%s2863_s5] sm:$0x3f]  ;;  %v2442_v37 = vld [vmem:[%s3946_s1 + $0x14] sm:$0xf]  ;;  %s2421_s5 = sshll.u32 %s188_s30, 7  ;;  %s2759_s6 = smov 114  }
  0x22   : > { %v936_v36 = vcombine.high %v928_v34, %v928_v34  ;;  %v935_v38 = vrot.slane %v921_v35, %v2856_v6  ;;  %v1178_v44 = vrot.slane %v1167_v42, %v2856_v6  ;;  %v1171_v45 = vcombine.high %v1167_v42, %v1167_v42 }
  0x23   : > { %437 = vrot.lane.b32.xlu1 %v428_v14, %s2750_s7  ;;  %v1061_v41 = vcombine.high %v1053_v39, %v1053_v39  ;;  %v1060_v43 = vrot.slane %v1046_v40, %v2856_v6  ;;  %v334_v58 = vsel %vm233_vm1, %v2873_v12, 0  ;;  %v328_v61 = vsel %vm233_vm1, %v2868_v9, 0 }
  0x24   : > { %v1186_v46 = vcombine.high %v1178_v44, %v1178_v44  ;;  %v1185_v47 = vrot.slane %v1171_v45, %v2856_v6  ;;  %v2446_v45 = vld [vmem:[%s3946_s1 + $0x18] sm:$0xf] }
  0x25   : > { %439 = vrot.lane.b32.xlu0 %v436_v16, %s2750_s7 }
  0x27   : > { %441 = vrot.lane.b32.xlu1 %v435_v18, %s2750_s7  ;;  %s3054_s7 = scalar_lea.vmem [#allocation2], %s2421_s5  ;;  %s2771_s5 = smov 4  }
  0x29   : > { %562 = vrot.lane.b32.xlu0 %v553_v19, %s2751_s8 }
  0x2b   : > { %564 = vrot.lane.b32.xlu1 %v561_v21, %s2751_s8  ;;  %v2434_v21 = vld [vmem:[%s3946_s1 + $0xc] sm:$0xf] }
  0x2d   : > { %566 = vrot.lane.b32.xlu0 %v560_v23, %s2751_s8 }
  0x2f   : > { %687 = vrot.lane.b32.xlu1 %v678_v24, %s2752_s9 }
  0x31   : > { %689 = vrot.lane.b32.xlu0 %v686_v26, %s2752_s9 }
  0x33   : > { %691 = vrot.lane.b32.xlu1 %v685_v28, %s2752_s9  ;;  %s2760_s9 = smov 74  }
  0x35   : > { %812 = vrot.lane.b32.xlu0 %v803_v29, %s2753_s10  ;;  %v2438_v29 = vld [vmem:[%s3946_s1 + $0x10] sm:$0xf] }
  0x37   : > { %814 = vrot.lane.b32.xlu1 %v811_v31, %s2753_s10 }
  0x39   : > { %816 = vrot.lane.b32.xlu0 %v810_v33, %s2753_s10  ;;  %s2761_s10 = smov 56  }
  0x3b   : > { %937 = vrot.lane.b32.xlu1 %v928_v34, %s2754_s11 }
  0x3d   : > { %939 = vrot.lane.b32.xlu0 %v936_v36, %s2754_s11 }
  0x3f   : > { %941 = vrot.lane.b32.xlu1 %v935_v38, %s2754_s11 }
  0x41   : > { %1062 = vrot.lane.b32.xlu0 %v1053_v39, %s2755_s12 }
  0x43   : > { %1064 = vrot.lane.b32.xlu1 %v1061_v41, %s2755_s12 }
  0x45   : > { %1066 = vrot.lane.b32.xlu0 %v1060_v43, %s2755_s12  ;;  %s2762_s12 = smov 38  }
  0x47   : > { %1187 = vrot.lane.b32.xlu1 %v1178_v44, %s2756_s13 }
  0x49   : > { %1189 = vrot.lane.b32.xlu0 %v1186_v46, %s2756_s13 }
  0x4b   : > { %1191 = vrot.lane.b32.xlu1 %v1185_v47, %s2756_s13  ;;  %s2763_s13 = smov 20  }
  0x4d   : > { %1297 = vperm.xlu0 %2669, %v197_v48  }
  0x4f   : > { %1308 = vperm.xlu1 %2670, %v198_v49  }
  0x51   : > { %2672 = vset.pattern.permute.xlu0 %v2757_v50 }
  0x53   : > { %2671 = vset.pattern.permute.xlu1 %v2757_v50 }
  0x54   : > { %1315 = vperm.xlu1 %2671, %v198_v49  }
  0x8f   : > { %v221_v51 = vpop.permute.xlu0 %220 }
  0x91   : > { %v225_v52 = vpop.permute.xlu1 %224 }
  0x92   : > { %v241_v53 = vsel %vm233_vm1, %v225_v52, 0 }
  0x93   : > { %v223_v54 = vpop.permute.xlu0 %222  ;;  %2483 = vmatpush3.bf16.msra.mxu1 %v241_v53 }
  0x94   : > { %v228_v56 = vsel %vm226_vm2, %v223_v54, %v225_v52  ;;  %v227_v57 = vsel %vm226_vm2, %v221_v51, %v223_v54  ;;  %2488 = vmatprep.subr.bf16.mxu1 %v2746_v4  ;;  %v2450_v52 = vld [vmem:[%s3946_s1 + $0x1c] sm:$0xf] }
  0x95   : > { %2424 = vmatprep.subr.msk.bf16.mxu0 %vm233_vm1, %v228_v56  ;;  %v235_v59 = vsel %vm233_vm1, %v227_v57, 0  ;;  %v438_v60 = vpop.permute.xlu1 %437  ;;  %v2454_v56 = vld [vmem:[%s3946_s1 + $0x20] sm:$0xf]  ;;  %v2758_v57 = vmov 1966171168  }
  0x96   : > { %244 = vmatpush1.bf16.msra.mxu0 %v235_v59  ;;  %2485 = vmatmul.mubr.msk.bf16.vlgmr.msra.gmra.mrb[0].mxu1 %vm229_vm3, %v2423_v55 }
  0x97   : > { %2489 = vmatpush3.bf16.msra.mxu1 %v334_v58  ;;  %2427 = vmatprep.subr.msk.bf16.mxu0 %vm233_vm1, %v2877_v13  ;;  %v440_v62 = vpop.permute.xlu0 %439  ;;  %v2430_v13 = vld [vmem:[%s3946_s1 + $0x8] sm:$0xf]  ;;  %v1324_v58 = vunpack.c.l.s4 %v2758_v57 }
  0x98   : > { %2490 = vmatprep.mubr.msk.bf16.mxu1 %vm2747_vm0, %v2746_v4  ;;  %2494 = vmatprep.subr.bf16.mxu1 %v2746_v4  ;;  %v444_v5 = vsel %vm443_vm4, %v438_v60, %v440_v62 }
  0x99   : > { %2425 = vmatmul.mubr.msk.bf16.vlgmr.msra.gmra.mrb[0].mxu0 %vm229_vm3, %v2423_v55  ;;  %v442_v63 = vpop.permute.xlu1 %441  ;;  %v450_v10 = vsel %vm233_vm1, %v444_v5, 0 }
  0x9a   : > { %337 = vmatpush1.bf16.msra.mxu0 %v328_v61  ;;  %v445_v0 = vsel %vm443_vm4, %v440_v62, %v442_v63  ;;  %368 = vmatprep.mubr.bf16.mxu0 %v2748_v7  ;;  %v456_v6 = vsel %vm233_vm1, %v442_v63, 0  ;;  %v1325_v61 = vunpack.c.0.s8 %v1324_v58 }
  0x9b   : > { %2431 = vmatprep.subr.msk.bf16.mxu0 %vm233_vm1, %v445_v0  ;;  %v563_v1 = vpop.permute.xlu0 %562 }
  0x9d   : > { %v565_v8 = vpop.permute.xlu1 %564 }
  0x9e   : > { %v569_v14 = vsel %vm568_vm5, %v563_v1, %v565_v8 }
  0x9f   : > { %v567_v9 = vpop.permute.xlu0 %566  ;;  %v575_v18 = vsel %vm233_vm1, %v569_v14, 0 }
  0xa0   : > { %v570_v11 = vsel %vm568_vm5, %v565_v8, %v567_v9  ;;  %v581_v15 = vsel %vm233_vm1, %v567_v9, 0 }
  0xa1   : > { %v688_v12 = vpop.permute.xlu1 %687 }
  0xa2   : > { %2491 = vmatmul.mubr.msk.bf16.vlgmr.msra.gmra.mrb[0].mxu1 %vm229_vm3, %v200_v2 }
  0xa3   : > { %2495 = vmatpush3.bf16.msra.mxu1 %v456_v6  ;;  %2496 = vmatprep.mubr.msk.bf16.mxu1 %vm2747_vm0, %v2746_v4  ;;  %v690_v16 = vpop.permute.xlu0 %689  ;;  %v3021_v6 = vsub.s32 %v1325_v61, %v2850_v3 }
  0xa4   : > { %2500 = vmatprep.subr.bf16.mxu1 %v2746_v4  ;;  %v694_v22 = vsel %vm693_vm6, %v688_v12, %v690_v16 }
  0xa5   : > { %2428 = vmatmul.mubr.msk.bf16.vlgmr.msra.gmra.mrb[0].mxu0 %vm229_vm3, %v200_v2  ;;  %v692_v17 = vpop.permute.xlu1 %691  ;;  %v700_v26 = vsel %vm233_vm1, %v694_v22, 0 }
  0xa6   : > { %459 = vmatpush1.bf16.msra.mxu0 %v450_v10  ;;  %490 = vmatprep.mubr.bf16.mxu0 %v2748_v7  ;;  %v695_v19 = vsel %vm693_vm6, %v690_v16, %v692_v17  ;;  %v706_v23 = vsel %vm233_vm1, %v692_v17, 0 }
  0xa7   : > { %2435 = vmatprep.subr.msk.bf16.mxu0 %vm233_vm1, %v570_v11  ;;  %v813_v20 = vpop.permute.xlu0 %812 }
  0xa9   : > { %v815_v24 = vpop.permute.xlu1 %814 }
  0xaa   : > { %v819_v30 = vsel %vm818_vm7, %v813_v20, %v815_v24 }
  0xab   : > { %v817_v25 = vpop.permute.xlu0 %816  ;;  %v825_v34 = vsel %vm233_vm1, %v819_v30, 0 }
  0xac   : > { %v820_v27 = vsel %vm818_vm7, %v815_v24, %v817_v25  ;;  %v831_v31 = vsel %vm233_vm1, %v817_v25, 0 }
  0xad   : > { %v938_v28 = vpop.permute.xlu1 %937 }
  0xae   : > { %2497 = vmatmul.mubr.msk.bf16.vlgmr.msra.gmra.mrb[0].mxu1 %vm229_vm3, %v2430_v13 }
  0xaf   : > { %2501 = vmatpush3.bf16.msra.mxu1 %v581_v15  ;;  %2502 = vmatprep.mubr.msk.bf16.mxu1 %vm2747_vm0, %v2746_v4  ;;  %v940_v32 = vpop.permute.xlu0 %939 }
  0xb0   : > { %2506 = vmatprep.subr.bf16.mxu1 %v2746_v4  ;;  %v944_v38 = vsel %vm943_vm8, %v938_v28, %v940_v32 }
  0xb1   : > { %2432 = vmatmul.mubr.msk.bf16.vlgmr.msra.gmra.mrb[0].mxu0 %vm229_vm3, %v2430_v13  ;;  %v942_v33 = vpop.permute.xlu1 %941  ;;  %v950_v42 = vsel %vm233_vm1, %v944_v38, 0 }
  0xb2   : > { %584 = vmatpush1.bf16.msra.mxu0 %v575_v18  ;;  %615 = vmatprep.mubr.bf16.mxu0 %v2748_v7  ;;  %v945_v35 = vsel %vm943_vm8, %v940_v32, %v942_v33  ;;  %v956_v39 = vsel %vm233_vm1, %v942_v33, 0  ;;  %v3025_v18 = vsub.s32 0, %v2850_v3 }
  0xb3   : > { %2439 = vmatprep.subr.msk.bf16.mxu0 %vm233_vm1, %v695_v19  ;;  %v1063_v36 = vpop.permute.xlu0 %1062 }
  0xb5   : > { %v1065_v40 = vpop.permute.xlu1 %1064 }
  0xb6   : > { %v1069_v46 = vsel %vm1068_vm9, %v1063_v36, %v1065_v40 }
  0xb7   : > { %v1067_v41 = vpop.permute.xlu0 %1066  ;;  %v1075_v50 = vsel %vm233_vm1, %v1069_v46, 0 }
  0xb8   : > { %v1070_v43 = vsel %vm1068_vm9, %v1065_v40, %v1067_v41  ;;  %v1081_v47 = vsel %vm233_vm1, %v1067_v41, 0 }
  0xb9   : > { %v1188_v44 = vpop.permute.xlu1 %1187 }
  0xba   : > { %2503 = vmatmul.mubr.msk.bf16.vlgmr.msra.gmra.mrb[0].mxu1 %vm229_vm3, %v2434_v21 }
  0xbb   : > { %2507 = vmatpush3.bf16.msra.mxu1 %v706_v23  ;;  %2508 = vmatprep.mubr.msk.bf16.mxu1 %vm2747_vm0, %v2746_v4  ;;  %v1190_v48 = vpop.permute.xlu0 %1189 }
  0xbc   : > { %2512 = vmatprep.subr.bf16.mxu1 %v2746_v4  ;;  %v1194_v53 = vsel %vm1193_vm10, %v1188_v44, %v1190_v48 }
  0xbd   : > { %2436 = vmatmul.mubr.msk.bf16.vlgmr.msra.gmra.mrb[0].mxu0 %vm229_vm3, %v2434_v21  ;;  %v1192_v49 = vpop.permute.xlu1 %1191  ;;  %v1200_v55 = vsel %vm233_vm1, %v1194_v53, 0 }
  0xbe   : > { %709 = vmatpush1.bf16.msra.mxu0 %v700_v26  ;;  %740 = vmatprep.mubr.bf16.mxu0 %v2748_v7  ;;  %v1195_v51 = vsel %vm1193_vm10, %v1190_v48, %v1192_v49  ;;  %v1206_v54 = vsel %vm233_vm1, %v1192_v49, 0  ;;  %v3090_v49 = vsub.s32 1, %v2850_v3 }
  0xbf   : > { %2443 = vmatprep.subr.msk.bf16.mxu0 %vm233_vm1, %v820_v27 }
  0xc6   : > { %2509 = vmatmul.mubr.msk.bf16.vlgmr.msra.gmra.mrb[0].mxu1 %vm229_vm3, %v2438_v29 }
  0xc7   : > { %2513 = vmatpush3.bf16.msra.mxu1 %v831_v31  ;;  %2514 = vmatprep.mubr.msk.bf16.mxu1 %vm2747_vm0, %v2746_v4 }
  0xc8   : > { %2518 = vmatprep.subr.bf16.mxu1 %v2746_v4 }
  0xc9   : > { %2440 = vmatmul.mubr.msk.bf16.vlgmr.msra.gmra.mrb[0].mxu0 %vm229_vm3, %v2438_v29 }
  0xca   : > { %834 = vmatpush1.bf16.msra.mxu0 %v825_v34  ;;  %865 = vmatprep.mubr.bf16.mxu0 %v2748_v7 }
  0xcb   : > { %2447 = vmatprep.subr.msk.bf16.mxu0 %vm233_vm1, %v945_v35 }
  0xcc   : > { %v1298_v60 = vpop.permute.xlu0 %1297 }
  0xce   : > { %v1309_v59 = vpop.permute.xlu1 %1308 }
  0xd2   : > { %2515 = vmatmul.mubr.msk.bf16.vlgmr.msra.gmra.mrb[0].mxu1 %vm229_vm3, %v2442_v37 }
  0xd3   : > { %2519 = vmatpush3.bf16.msra.mxu1 %v956_v39  ;;  %2520 = vmatprep.mubr.msk.bf16.mxu1 %vm2747_vm0, %v2746_v4 }
  0xd4   : > { %2524 = vmatprep.subr.bf16.mxu1 %v2746_v4 }
  0xd5   : > { %2444 = vmatmul.mubr.msk.bf16.vlgmr.msra.gmra.mrb[0].mxu0 %vm229_vm3, %v2442_v37 }
  0xd6   : > { %959 = vmatpush1.bf16.msra.mxu0 %v950_v42  ;;  %990 = vmatprep.mubr.bf16.mxu0 %v2748_v7 }
  0xd7   : > { %2451 = vmatprep.subr.msk.bf16.mxu0 %vm233_vm1, %v1070_v43 }
  0xde   : > { %2521 = vmatmul.mubr.msk.bf16.vlgmr.msra.gmra.mrb[0].mxu1 %vm229_vm3, %v2446_v45 }
  0xdf   : > { %2525 = vmatpush3.bf16.msra.mxu1 %v1081_v47  ;;  %2526 = vmatprep.mubr.msk.bf16.mxu1 %vm2747_vm0, %v2746_v4 }
  0xe0   : > { %2530 = vmatprep.subr.bf16.mxu1 %v2746_v4 }
  0xe1   : > { %2448 = vmatmul.mubr.msk.bf16.vlgmr.msra.gmra.mrb[0].mxu0 %vm229_vm3, %v2446_v45 }
  0xe2   : > { %1084 = vmatpush1.bf16.msra.mxu0 %v1075_v50  ;;  %1115 = vmatprep.mubr.bf16.mxu0 %v2748_v7 }
  0xe3   : > { %2455 = vmatprep.subr.msk.bf16.mxu0 %vm233_vm1, %v1195_v51 }
  0xea   : > { %2527 = vmatmul.mubr.msk.bf16.vlgmr.msra.gmra.mrb[0].mxu1 %vm229_vm3, %v2450_v52 }
  0xeb   : > { %2531 = vmatpush3.bf16.msra.mxu1 %v1206_v54  ;;  %2532 = vmatprep.mubr.msk.bf16.mxu1 %vm2747_vm0, %v2746_v4 }
  0xed   : > { %2452 = vmatmul.mubr.msk.bf16.vlgmr.msra.gmra.mrb[0].mxu0 %vm229_vm3, %v2450_v52 }
  0xee   : > { %1209 = vmatpush1.bf16.msra.mxu0 %v1200_v55  ;;  %1240 = vmatprep.mubr.bf16.mxu0 %v2748_v7  ;;  %v1316_v7 = vpop.permute.xlu1 %1315 }
  0xf6   : > { %2533 = vmatmul.mubr.msk.bf16.vlgmr.msra.gmra.mrb[0].mxu1 %vm229_vm3, %v2454_v56 }
  0xf9   : > { %2456 = vmatmul.mubr.msk.bf16.vlgmr.msra.gmra.mrb[0].mxu0 %vm229_vm3, %v2454_v56 }
 0x1c9   : > { %v1283_v62 = vpop.f32.mrb[0].mxu1 }
 0x1ca   : > { %vm1294_vm11 = vcmp.ge.f32.partialorder %v1283_v62, 0.0  ;;  %v1302_v4 = vmul.f32 %v1298_v60, %v1283_v62  ;;  %v2534_v63 = vpop.f32.mrb[1].mxu1 }
 0x1cb   : > { %v1286_v0 = vpop.f32.mrb[2].mxu1 }
 0x1cc   : > { %v1305_v1 = vsel %vm1294_vm11, %v1283_v62, %v1302_v4  ;;  %v1242_v2 = vpop.f32.mrb[0].mxu0  ;;  %v2535_v5 = vpop.f32.mrb[3].mxu1 }
 0x1cd   : > { %v1313_v8 = vmul.f32 %v1309_v59, %v1305_v1  ;;  %vm1292_vm12 = vcmp.ge.f32.partialorder %v1242_v2, 0.0  ;;  %v1300_v9 = vmul.f32 %v1298_v60, %v1242_v2  ;;  %v1244_v10 = vpop.f32.mrb[1].mxu0 }
 0x1ce   : > { %vm1293_vm13 = vcmp.ge.f32.partialorder %v1244_v10, 0.0  ;;  %v1301_v11 = vmul.f32 %v1298_v60, %v1244_v10  ;;  %v1246_v12 = vpop.f32.mrb[2].mxu0 }
 0x1cf   : > { %v1303_v13 = vsel %vm1292_vm12, %v1242_v2, %v1300_v9  ;;  %v1320_v14 = vadd.f32 %v1316_v7, %v1313_v8  ;;  %v1247_v15 = vpop.f32.mrb[3].mxu0 }
 0x1d0   : > { %v1311_v16 = vmul.f32 %v1309_v59, %v1303_v13  ;;  %v1304_v17 = vsel %vm1293_vm13, %v1244_v10, %v1301_v11 }
 0x1d1   : > { %v1312_v19 = vmul.f32 %v1309_v59, %v1304_v17  ;;  %v2235_v20 = vrot.slane %v1320_v14, %v3021_v6  ;;  %v2228_v30 = vcombine.high %v1320_v14, %v1320_v14 }
 0x1d2   : > { %v1318_v21 = vadd.f32 %v1316_v7, %v1311_v16 }
 0x1d3   : > { %v3030_v22 = vadd.f32 %v1316_v7, %v1312_v19  ;;  %v3033_v23 = vrot.slane %v2235_v20, %v3021_v6  ;;  %v2243_v24 = vcombine.high %v2235_v20, %v2235_v20  ;;  %v2242_v43 = vrot.slane %v2228_v30, %v3021_v6 }
 0x1d4   : > { %v1322_v25 = vcombine.high %v1318_v21, %v1318_v21  ;;  %v1329_v26 = vrot.slane %v1318_v21, %v3021_v6 }
 0x1d5   : > { %v2280_v27 = vrot.slane %v3033_v23, %v3025_v18  ;;  %v2265_v28 = vrot.slane %v2243_v24, %v3021_v6  ;;  %v1613_v29 = vcombine.low %v1318_v21, %v3030_v22  ;;  %v1614_v34 = vcombine.high %v1318_v21, %v3030_v22 }
 0x1d6   : > { %v1336_v31 = vrot.slane %v1322_v25, %v3021_v6  ;;  %v1337_v32 = vcombine.high %v1329_v26, %v1329_v26  ;;  %v1345_v33 = vrot.slane %v1329_v26, %v3021_v6  ;;  %v1791_v36 = vrot.slane %v3030_v22, %v3021_v6 }
 0x1d7   : > { %2309 = vrot.lane.b32.xlu0 %v2280_v27, %s2759_s6  ;;  %v2284_v35 = vrot.slane %v2265_v28, %v3025_v18  ;;  %v3048_v37 = vrot.slane %v1613_v29, %v3021_v6  ;;  %v1628_v42 = vrot.slane %v1614_v34, %v3021_v6  ;;  %v2058_v51 = vcombine.low %v3030_v22, %v1320_v14 }
 0x1d8   : > { %v1338_v38 = vcombine.high %v1336_v31, %v1336_v31  ;;  %v3051_v39 = vrot.slane %v1336_v31, %v3021_v6  ;;  %v1359_v40 = vrot.slane %v1337_v32, %v3021_v6  ;;  %1380 = vst.msk [vmem:[%s3054_s7] sm:$0x1] %vm1379_vm14, %v1345_v33  ;;  %v3059_v41 = vrot.slane %v1345_v33, %v3025_v18 }
 0x1d9   : > { %2311 = vrot.lane.b32.xlu1 %v2284_v35, %s2759_s6  ;;  %v3079_v46 = vrot.slane %v3048_v37, %v3021_v6  ;;  %v3082_v47 = vrot.slane %v1628_v42, %v3021_v6  ;;  %v3084_v48 = vcombine.high %v1345_v33, %v1345_v33  ;;  %v1799_v50 = vcombine.high %v1791_v36, %v1791_v36 }
 0x1da   : > { %v3065_v44 = vrot.slane %v1338_v38, %v3021_v6  ;;  %1381 = vst.msk [vmem:[%s3054_s7 + $0x10] sm:$0x1] %vm1379_vm14, %v1359_v40  ;;  %1384 = vst.msk [vmem:[%s3054_s7 + $0x40] sm:$0x1] %vm1379_vm14, %v3051_v39  ;;  %v3073_v45 = vrot.slane %v1359_v40, %v3025_v18  ;;  %v3096_v52 = vrot.slane %v1791_v36, %v3021_v6 }
 0x1db   : > { %1420 = vrot.lane.b32.xlu0 %v3059_v41, %s2751_s8  ;;  %v3099_v53 = vrot.slane %v2242_v43, %v3021_v6  ;;  %1382 = vst.msk [vmem:[%s3054_s7 + $0x20] sm:$0x1] %vm1379_vm14, %v3084_v48  ;;  %v3106_v3 = vrot.slane %v3051_v39, %v3025_v18  ;;  %v2059_v54 = vcombine.high %v3030_v22, %v1320_v14 }
 0x1dc   : > { %1385 = vst.msk [vmem:[%s3054_s7 + $0x50] sm:$0x1] %vm1379_vm14, %v3065_v44  ;;  %v2066_v55 = vrot.slane %v2058_v51, %v3021_v6  ;;  %v2275_v56 = vcombine.high %v2265_v28, %v2265_v28  ;;  %v2244_v57 = vcombine.high %v2242_v43, %v2242_v43  ;;  %v1369_v58 = vcombine.high %v1359_v40, %v1359_v40 }
 0x1dd   : > { %1422 = vrot.lane.b32.xlu1 %v3073_v45, %s2751_s8  ;;  %v2073_v59 = vrot.slane %v2059_v54, %v3021_v6  ;;  %v3115_v60 = vrot.slane %v3065_v44, %v3025_v18  ;;  %v1666_v61 = vrot.slane %v3079_v46, %v3025_v18  ;;  %v1698_v62 = vrot.slane %v3082_v47, %v3025_v18 }
 0x1de   : > { %v3122_v4 = vrot.slane %v1799_v50, %v3021_v6  ;;  %v3125_v63 = vrot.slane %v2066_v55, %v3021_v6  ;;  %v3128_v0 = vrot.slane %v2275_v56, %v3025_v18  ;;  %v3131_v7 = vrot.slane %v2244_v57, %v3021_v6  ;;  %1383 = vst.msk [vmem:[%s3054_s7 + $0x30] sm:$0x1] %vm1379_vm14, %v1369_v58 }
 0x1df   : > { %1452 = vrot.lane.b32.xlu0 %v3059_v41, %s2754_s11  ;;  %v2274_v1 = vcombine.high %v3099_v53, %v3099_v53  ;;  %v3140_v2 = vrot.slane %v2073_v59, %v3021_v6  ;;  %v3143_v5 = vrot.slane %v1369_v58, %v3025_v18  ;;  %v1829_v8 = vcombine.high %v3096_v52, %v3096_v52 }
 0x1e0   : > { %v2074_v9 = vcombine.high %v2066_v55, %v2066_v55  ;;  %v2075_v10 = vcombine.high %v2073_v59, %v2073_v59  ;;  %v2300_v11 = vrot.slane %v3131_v7, %v3025_v18  ;;  %v1784_v12 = vcombine.high %v3030_v22, %v3030_v22 }
 0x1e1   : > { %1454 = vrot.lane.b32.xlu1 %v3073_v45, %s2754_s11  ;;  %v2276_v13 = vcombine.high %v3131_v7, %v3131_v7  ;;  %v3156_v14 = vrot.slane %v1829_v8, %v3025_v18  ;;  %v1629_v15 = vcombine.high %v3048_v37, %v3048_v37  ;;  %v3162_v16 = vcombine.high %v3079_v46, %v3079_v46 }
 0x1e2   : > { %v1798_v17 = vrot.slane %v1784_v12, %v3021_v6  ;;  %v1630_v19 = vcombine.high %v1628_v42, %v1628_v42  ;;  %v3167_v20 = vcombine.high %v3082_v47, %v3082_v47  ;;  %v1831_v21 = vcombine.high %v3122_v4, %v3122_v4 }
 0x1e3   : > { %1484 = vrot.lane.b32.xlu0 %v3059_v41, %s2760_s9  ;;  %v3174_v22 = vrot.slane %v1629_v15, %v3021_v6  ;;  %v1686_v24 = vrot.slane %v3162_v16, %v3090_v49  ;;  %v2111_v25 = vrot.slane %v3125_v63, %v3025_v18  ;;  %v2143_v26 = vrot.slane %v3140_v2, %v3025_v18 }
 0x1e4   : > { %v1814_v27 = vrot.slane %v1798_v17, %v3021_v6  ;;  %v3184_v28 = vrot.slane %v1630_v19, %v3021_v6  ;;  %v1718_v29 = vrot.slane %v3167_v20, %v3090_v49  ;;  %v3189_v30 = vrot.slane %v1831_v21, %v3025_v18 }
 0x1e5   : > { %1486 = vrot.lane.b32.xlu1 %v3073_v45, %s2760_s9  ;;  %v1678_v31 = vrot.slane %v3174_v22, %v3090_v49  ;;  %v1800_v32 = vcombine.high %v1798_v17, %v1798_v17  ;;  %v1368_v33 = vcombine.high %v3051_v39, %v3051_v39  ;;  %v3198_v34 = vrot.slane %v2074_v9, %v3021_v6 }
 0x1e6   : > { %v3201_v35 = vrot.slane %v1814_v27, %v3025_v18  ;;  %v1710_v36 = vrot.slane %v3184_v28, %v3090_v49  ;;  %v3207_v37 = vcombine.high %v3125_v63, %v3125_v63  ;;  %v3210_v38 = vrot.slane %v2075_v10, %v3021_v6 }
 0x1e7   : > { %1516 = vrot.lane.b32.xlu0 %v3059_v41, %s2761_s10  ;;  %v1828_v39 = vrot.slane %v1800_v32, %v3021_v6  ;;  %v3216_v40 = vrot.slane %v1368_v33, %v3025_v18  ;;  %1386 = vst.msk [vmem:[%s3054_s7 + $0x60] sm:$0x1] %vm1379_vm14, %v1368_v33  ;;  %v2123_v42 = vrot.slane %v3198_v34, %v3090_v49 }
 0x1e8   : > { %v3224_v43 = vcombine.high %v3140_v2, %v3140_v2  ;;  %v2131_v50 = vrot.slane %v3207_v37, %v3090_v49  ;;  %v2155_v51 = vrot.slane %v3210_v38, %v3090_v49  ;;  %v1674_v6 = vrot.slane %v3174_v22, %v3025_v18 }
 0x1e9   : > { %1518 = vrot.lane.b32.xlu1 %v3073_v45, %s2761_s10  ;;  %v1682_v54 = vrot.slane %v3162_v16, %v3025_v18  ;;  %v3237_v55 = vrot.slane %v1828_v39, %v3025_v18  ;;  %v1706_v57 = vrot.slane %v3184_v28, %v3025_v18  ;;  %v1370_v58 = vcombine.high %v3065_v44, %v3065_v44 }
 0x1ea   : > { %v2163_v56 = vrot.slane %v3224_v43, %v3090_v49  ;;  %v1714_v59 = vrot.slane %v3167_v20, %v3025_v18  ;;  %v1830_v8 = vcombine.high %v1814_v27, %v1814_v27  ;;  %v3249_v9 = vcombine.high %v3174_v22, %v3174_v22 }
 0x1eb   : > { %1548 = vrot.lane.b32.xlu0 %v3059_v41, %s2762_s12  ;;  %v2119_v10 = vrot.slane %v3198_v34, %v3025_v18  ;;  %v3256_v12 = vrot.slane %v1370_v58, %v3025_v18  ;;  %1387 = vst.msk [vmem:[%s3054_s7 + $0x70] sm:$0x1] %vm1379_vm14, %v1370_v58  ;;  %v3262_v44 = vcombine.high %v3184_v28, %v3184_v28 }
 0x1ec   : > { %v1832_v17 = vcombine.high %v1828_v39, %v1828_v39  ;;  %v3267_v19 = vrot.slane %v1830_v8, %v3025_v18  ;;  %v1694_v21 = vrot.slane %v3249_v9, %v3090_v49  ;;  %v3288_v27 = vcombine.high %v3198_v34, %v3198_v34 }
 0x1ed   : > { %1550 = vrot.lane.b32.xlu1 %v3073_v45, %s2762_s12  ;;  %v3292_v32 = vcombine.high %v3210_v38, %v3210_v38  ;;  %v1836_v8 = vrot.slane %v3096_v52, %v3025_v18  ;;  %v1702_v52 = vrot.slane %v3082_v47, %v3090_v49 }
 0x1ee   : > { %v3280_v39 = vrot.slane %v1832_v17, %v3025_v18  ;;  %v3304_v17 = vrot.slane %v2276_v13, %v3025_v18  ;;  %v2139_v58 = vrot.slane %v3288_v27, %v3090_v49  ;;  %v2135_v15 = vrot.slane %v3288_v27, %v3025_v18 }
 0x1ef   : > { %1580 = vrot.lane.b32.xlu0 %v3059_v41, %s2763_s13  ;;  %v3298_v41 = vrot.slane %v2274_v1, %v3025_v18  ;;  %v2171_v1 = vrot.slane %v3292_v32, %v3090_v49  ;;  %v2167_v33 = vrot.slane %v3292_v32, %v3025_v18  ;;  %v1840_v13 = vrot.slane %v3122_v4, %v3025_v18 }
 0x1f1   : > { %1582 = vrot.lane.b32.xlu1 %v3073_v45, %s2763_s13  ;;  %v1670_v45 = vrot.slane %v3079_v46, %v3090_v49 }
 0x1f3   : > { %1865 = vrot.lane.b32.xlu0 %v1836_v8, %s2764_s14 }
 0x1f5   : > { %1729 = vrot.lane.b32.xlu1 %v1670_v45, %s2765_s20  ;;  %v2273_v45 = vcombine.high %v3033_v23, %v3033_v23  ;;  %v1399_v23 = vrot.slane %v3084_v48, %v3025_v18 }
 0x1f7   : > { %1897 = vrot.lane.b32.xlu0 %v1836_v8, %s2766_s22  ;;  %v2288_v4 = vrot.slane %v2273_v45, %v3025_v18 }
 0x1f9   : > { %1745 = vrot.lane.b32.xlu1 %v1702_v52, %s2765_s20  ;;  %v2296_v52 = vrot.slane %v3099_v53, %v3025_v18  ;;  %v2147_v53 = vrot.slane %v3140_v2, %v3090_v49 }
 0x1fb   : > { %1929 = vrot.lane.b32.xlu0 %v1836_v8, %s2767_s23 }
 0x1fd   : > { %1867 = vrot.lane.b32.xlu1 %v1840_v13, %s2764_s14 }
 0x1ff   : > { %1961 = vrot.lane.b32.xlu0 %v1836_v8, %s2768_s27 }
 0x201   : > { %1899 = vrot.lane.b32.xlu1 %v1840_v13, %s2766_s22 }
 0x203   : > { %1993 = vrot.lane.b32.xlu0 %v1836_v8, %s2769_s28 }
 0x205   : > { %1931 = vrot.lane.b32.xlu1 %v1840_v13, %s2767_s23 }
 0x207   : > { %2025 = vrot.lane.b32.xlu0 %v1836_v8, %s2770_s29  ;;  %v2115_v8 = vrot.slane %v3125_v63, %v3090_v49 }
 0x209   : > { %1963 = vrot.lane.b32.xlu1 %v1840_v13, %s2768_s27 }
 0x20b   : > { %2313 = vrot.lane.b32.xlu0 %v2288_v4, %s2759_s6 }
 0x20d   : > { %1995 = vrot.lane.b32.xlu1 %v1840_v13, %s2769_s28 }
 0x20f   : > { %2317 = vrot.lane.b32.xlu0 %v2296_v52, %s2759_s6 }
 0x211   : > { %2027 = vrot.lane.b32.xlu1 %v1840_v13, %s2770_s29 }
 0x213   : > { %1424 = vrot.lane.b32.xlu0 %v1399_v23, %s2751_s8 }
 0x215   : > { %2174 = vrot.lane.b32.xlu1 %v2115_v8, %s2771_s5 }
 0x217   : > { %1428 = vrot.lane.b32.xlu0 %v3106_v3, %s2751_s8 }
 0x219   : > { %2190 = vrot.lane.b32.xlu1 %v2147_v53, %s2771_s5 }
 0x21b   : > { %1456 = vrot.lane.b32.xlu0 %v1399_v23, %s2754_s11 }
 0x21d   : > { %2315 = vrot.lane.b32.xlu1 %v3128_v0, %s2759_s6 }
 0x21f   : > { %1460 = vrot.lane.b32.xlu0 %v3106_v3, %s2754_s11 }
 0x221   : > { %2319 = vrot.lane.b32.xlu1 %v2300_v11, %s2759_s6 }
 0x223   : > { %1488 = vrot.lane.b32.xlu0 %v1399_v23, %s2760_s9 }
 0x225   : > { %1426 = vrot.lane.b32.xlu1 %v3143_v5, %s2751_s8 }
 0x227   : > { %1492 = vrot.lane.b32.xlu0 %v3106_v3, %s2760_s9 }
 0x229   : > { %1430 = vrot.lane.b32.xlu1 %v3115_v60, %s2751_s8 }
 0x22b   : > { %1520 = vrot.lane.b32.xlu0 %v1399_v23, %s2761_s10 }
 0x22d   : > { %1458 = vrot.lane.b32.xlu1 %v3143_v5, %s2754_s11 }
 0x22f   : > { %1524 = vrot.lane.b32.xlu0 %v3106_v3, %s2761_s10 }
 0x231   : > { %1462 = vrot.lane.b32.xlu1 %v3115_v60, %s2754_s11 }
 0x233   : > { %1552 = vrot.lane.b32.xlu0 %v1399_v23, %s2762_s12 }
 0x235   : > { %1490 = vrot.lane.b32.xlu1 %v3143_v5, %s2760_s9 }
 0x237   : > { %1556 = vrot.lane.b32.xlu0 %v3106_v3, %s2762_s12 }
 0x239   : > { %1494 = vrot.lane.b32.xlu1 %v3115_v60, %s2760_s9 }
 0x23b   : > { %1584 = vrot.lane.b32.xlu0 %v1399_v23, %s2763_s13 }
 0x23d   : > { %1522 = vrot.lane.b32.xlu1 %v3143_v5, %s2761_s10 }
 0x23f   : > { %1588 = vrot.lane.b32.xlu0 %v3106_v3, %s2763_s13 }
 0x241   : > { %1526 = vrot.lane.b32.xlu1 %v3115_v60, %s2761_s10 }
 0x243   : > { %1727 = vrot.lane.b32.xlu0 %v1666_v61, %s2765_s20 }
 0x245   : > { %1554 = vrot.lane.b32.xlu1 %v3143_v5, %s2762_s12 }
 0x247   : > { %1743 = vrot.lane.b32.xlu0 %v1698_v62, %s2765_s20 }
 0x249   : > { %v2310_v48 = vpop.permute.xlu0 %2309  ;;  %1558 = vrot.lane.b32.xlu1 %v3115_v60, %s2762_s12 }
 0x24a   : > { %2333 = vst.msk [vmem:[%s3054_s7 + $0xf] sm:$0x1] %vm1379_vm14, %v2310_v48 }
 0x24b   : > { %v2312_v3 = vpop.permute.xlu1 %2311  ;;  %1869 = vrot.lane.b32.xlu0 %v3156_v14, %s2764_s14 }
 0x24c   : > { %2334 = vst.msk [vmem:[%s3054_s7 + $0x1f] sm:$0x1] %vm1379_vm14, %v2312_v3 }
 0x24d   : > { %v1421_v46 = vpop.permute.xlu0 %1420  ;;  %1586 = vrot.lane.b32.xlu1 %v3143_v5, %s2763_s13 }
 0x24e   : > { %1444 = vst.msk [vmem:[%s3054_s7 + $0x1] sm:$0x1] %vm1379_vm14, %v1421_v46 }
 0x24f   : > { %v1423_v47 = vpop.permute.xlu1 %1422  ;;  %1873 = vrot.lane.b32.xlu0 %v3201_v35, %s2764_s14 }
 0x250   : > { %1445 = vst.msk [vmem:[%s3054_s7 + $0x11] sm:$0x1] %vm1379_vm14, %v1423_v47 }
 0x251   : > { %v1453_v61 = vpop.permute.xlu0 %1452  ;;  %1590 = vrot.lane.b32.xlu1 %v3115_v60, %s2763_s13 }
 0x252   : > { %1476 = vst.msk [vmem:[%s3054_s7 + $0x2] sm:$0x1] %vm1379_vm14, %v1453_v61 }
 0x253   : > { %v1455_v62 = vpop.permute.xlu1 %1454  ;;  %1901 = vrot.lane.b32.xlu0 %v3156_v14, %s2766_s22 }
 0x254   : > { %1477 = vst.msk [vmem:[%s3054_s7 + $0x12] sm:$0x1] %vm1379_vm14, %v1455_v62 }
 0x255   : > { %v1485_v0 = vpop.permute.xlu0 %1484  ;;  %1733 = vrot.lane.b32.xlu1 %v1678_v31, %s2765_s20 }
 0x256   : > { %1508 = vst.msk [vmem:[%s3054_s7 + $0x3] sm:$0x1] %vm1379_vm14, %v1485_v0 }
 0x257   : > { %v1487_v60 = vpop.permute.xlu1 %1486  ;;  %1905 = vrot.lane.b32.xlu0 %v3201_v35, %s2766_s22 }
 0x258   : > { %1509 = vst.msk [vmem:[%s3054_s7 + $0x13] sm:$0x1] %vm1379_vm14, %v1487_v60 }
 0x259   : > { %v1517_v7 = vpop.permute.xlu0 %1516  ;;  %1737 = vrot.lane.b32.xlu1 %v1686_v24, %s2765_s20 }
 0x25a   : > { %1540 = vst.msk [vmem:[%s3054_s7 + $0x4] sm:$0x1] %vm1379_vm14, %v1517_v7 }
 0x25b   : > { %v1519_v5 = vpop.permute.xlu1 %1518  ;;  %1933 = vrot.lane.b32.xlu0 %v3156_v14, %s2767_s23 }
 0x25c   : > { %1541 = vst.msk [vmem:[%s3054_s7 + $0x14] sm:$0x1] %vm1379_vm14, %v1519_v5 }
 0x25d   : > { %v1549_v11 = vpop.permute.xlu0 %1548  ;;  %1749 = vrot.lane.b32.xlu1 %v1710_v36, %s2765_s20 }
 0x25e   : > { %1572 = vst.msk [vmem:[%s3054_s7 + $0x5] sm:$0x1] %vm1379_vm14, %v1549_v11 }
 0x25f   : > { %v1551_v31 = vpop.permute.xlu1 %1550  ;;  %1937 = vrot.lane.b32.xlu0 %v3201_v35, %s2767_s23 }
 0x260   : > { %1573 = vst.msk [vmem:[%s3054_s7 + $0x15] sm:$0x1] %vm1379_vm14, %v1551_v31 }
 0x261   : > { %v1581_v24 = vpop.permute.xlu0 %1580  ;;  %1753 = vrot.lane.b32.xlu1 %v1718_v29, %s2765_s20 }
 0x262   : > { %1604 = vst.msk [vmem:[%s3054_s7 + $0x6] sm:$0x1] %vm1379_vm14, %v1581_v24 }
 0x263   : > { %v1583_v13 = vpop.permute.xlu1 %1582  ;;  %1965 = vrot.lane.b32.xlu0 %v3156_v14, %s2768_s27 }
 0x264   : > { %1605 = vst.msk [vmem:[%s3054_s7 + $0x16] sm:$0x1] %vm1379_vm14, %v1583_v13 }
 0x265   : > { %v1866_v36 = vpop.permute.xlu0 %1865  ;;  %1871 = vrot.lane.b32.xlu1 %v3189_v30, %s2764_s14 }
 0x266   : > { %1889 = vst.msk [vmem:[%s3054_s7 + $0x8] sm:$0x1] %vm1379_vm14, %v1866_v36 }
 0x267   : > { %v3471_v45 = vpop.permute.xlu1 %1729  ;;  %1969 = vrot.lane.b32.xlu0 %v3201_v35, %s2768_s27 }
 0x269   : > { %v1898_v29 = vpop.permute.xlu0 %1897  ;;  %1875 = vrot.lane.b32.xlu1 %v3237_v55, %s2764_s14 }
 0x26a   : > { %1921 = vst.msk [vmem:[%s3054_s7 + $0x9] sm:$0x1] %vm1379_vm14, %v1898_v29 }
 0x26b   : > { %v3479_v4 = vpop.permute.xlu1 %1745  ;;  %1997 = vrot.lane.b32.xlu0 %v3156_v14, %s2769_s28 }
 0x26d   : > { %v1930_v52 = vpop.permute.xlu0 %1929  ;;  %1903 = vrot.lane.b32.xlu1 %v3189_v30, %s2766_s22 }
 0x26e   : > { %1953 = vst.msk [vmem:[%s3054_s7 + $0xa] sm:$0x1] %vm1379_vm14, %v1930_v52 }
 0x26f   : > { %v1868_v23 = vpop.permute.xlu1 %1867  ;;  %2001 = vrot.lane.b32.xlu0 %v3201_v35, %s2769_s28 }
 0x270   : > { %1890 = vst.msk [vmem:[%s3054_s7 + $0x18] sm:$0x1] %vm1379_vm14, %v1868_v23  ;;  %v3952_v23 = vrot.slane %v3262_v44, %v3090_v49 }
 0x271   : > { %v1962_v8 = vpop.permute.xlu0 %1961  ;;  %1907 = vrot.lane.b32.xlu1 %v3237_v55, %s2766_s22 }
 0x272   : > { %1985 = vst.msk [vmem:[%s3054_s7 + $0xb] sm:$0x1] %vm1379_vm14, %v1962_v8  ;;  %v3953_v8 = vrot.slane %v3207_v37, %v3025_v18 }
 0x273   : > { %v1900_v53 = vpop.permute.xlu1 %1899  ;;  %2172 = vrot.lane.b32.xlu0 %v2111_v25, %s2771_s5 }
 0x274   : > { %1922 = vst.msk [vmem:[%s3054_s7 + $0x19] sm:$0x1] %vm1379_vm14, %v1900_v53  ;;  %v3954_v53 = vrot.slane %v3210_v38, %v3025_v18 }
 0x275   : > { %v1994_v48 = vpop.permute.xlu0 %1993  ;;  %1935 = vrot.lane.b32.xlu1 %v3189_v30, %s2767_s23 }
 0x276   : > { %2017 = vst.msk [vmem:[%s3054_s7 + $0xc] sm:$0x1] %vm1379_vm14, %v1994_v48 }
 0x277   : > { %v1932_v3 = vpop.permute.xlu1 %1931  ;;  %2188 = vrot.lane.b32.xlu0 %v2143_v26, %s2771_s5 }
 0x278   : > { %1954 = vst.msk [vmem:[%s3054_s7 + $0x1a] sm:$0x1] %vm1379_vm14, %v1932_v3  ;;  %v3955_v3 = vrot.slane %v3224_v43, %v3025_v18 }
 0x279   : > { %v2026_v63 = vpop.permute.xlu0 %2025  ;;  %1939 = vrot.lane.b32.xlu1 %v3237_v55, %s2767_s23 }
 0x27a   : > { %2049 = vst.msk [vmem:[%s3054_s7 + $0xd] sm:$0x1] %vm1379_vm14, %v2026_v63 }
 0x27b   : > { %v1964_v25 = vpop.permute.xlu1 %1963  ;;  %2029 = vrot.lane.b32.xlu0 %v3156_v14, %s2770_s29 }
 0x27c   : > { %1986 = vst.msk [vmem:[%s3054_s7 + $0x1b] sm:$0x1] %vm1379_vm14, %v1964_v25 }
 0x27d   : > { %v2314_v46 = vpop.permute.xlu0 %2313  ;;  %1967 = vrot.lane.b32.xlu1 %v3189_v30, %s2768_s27 }
 0x27e   : > { %2335 = vst.msk [vmem:[%s3054_s7 + $0x2f] sm:$0x1] %vm1379_vm14, %v2314_v46  ;;  %v3956_v46 = vrot.slane %v3249_v9, %v3025_v18 }
 0x27f   : > { %v1996_v2 = vpop.permute.xlu1 %1995  ;;  %2033 = vrot.lane.b32.xlu0 %v3201_v35, %s2770_s29 }
 0x280   : > { %2018 = vst.msk [vmem:[%s3054_s7 + $0x1c] sm:$0x1] %vm1379_vm14, %v1996_v2 }
 0x281   : > { %v2318_v26 = vpop.permute.xlu0 %2317  ;;  %1971 = vrot.lane.b32.xlu1 %v3237_v55, %s2768_s27 }
 0x282   : > { %2337 = vst.msk [vmem:[%s3054_s7 + $0x4f] sm:$0x1] %vm1379_vm14, %v2318_v26  ;;  %v3957_v26 = vrot.slane %v3262_v44, %v3025_v18 }
 0x283   : > { %v2028_v14 = vpop.permute.xlu1 %2027  ;;  %1432 = vrot.lane.b32.xlu0 %v3216_v40, %s2751_s8 }
 0x284   : > { %2050 = vst.msk [vmem:[%s3054_s7 + $0x1d] sm:$0x1] %vm1379_vm14, %v2028_v14 }
 0x285   : > { %v1425_v47 = vpop.permute.xlu0 %1424  ;;  %1999 = vrot.lane.b32.xlu1 %v3189_v30, %s2769_s28 }
 0x286   : > { %1446 = vst.msk [vmem:[%s3054_s7 + $0x21] sm:$0x1] %vm1379_vm14, %v1425_v47 }
 0x287   : > { %v3539_v35 = vpop.permute.xlu1 %2174  ;;  %1464 = vrot.lane.b32.xlu0 %v3216_v40, %s2754_s11 }
 0x289   : > { %v1429_v61 = vpop.permute.xlu0 %1428  ;;  %2003 = vrot.lane.b32.xlu1 %v3237_v55, %s2769_s28 }
 0x28a   : > { %1448 = vst.msk [vmem:[%s3054_s7 + $0x41] sm:$0x1] %vm1379_vm14, %v1429_v61 }
 0x28b   : > { %v3547_v62 = vpop.permute.xlu1 %2190  ;;  %1496 = vrot.lane.b32.xlu0 %v3216_v40, %s2760_s9 }
 0x28d   : > { %v1457_v0 = vpop.permute.xlu0 %1456  ;;  %2178 = vrot.lane.b32.xlu1 %v2123_v42, %s2771_s5 }
 0x28e   : > { %1478 = vst.msk [vmem:[%s3054_s7 + $0x22] sm:$0x1] %vm1379_vm14, %v1457_v0 }
 0x28f   : > { %v2316_v60 = vpop.permute.xlu1 %2315  ;;  %1528 = vrot.lane.b32.xlu0 %v3216_v40, %s2761_s10 }
 0x290   : > { %2336 = vst.msk [vmem:[%s3054_s7 + $0x3f] sm:$0x1] %vm1379_vm14, %v2316_v60 }
 0x291   : > { %v1461_v7 = vpop.permute.xlu0 %1460  ;;  %2182 = vrot.lane.b32.xlu1 %v2131_v50, %s2771_s5 }
 0x292   : > { %1480 = vst.msk [vmem:[%s3054_s7 + $0x42] sm:$0x1] %vm1379_vm14, %v1461_v7 }
 0x293   : > { %v2320_v42 = vpop.permute.xlu1 %2319  ;;  %1560 = vrot.lane.b32.xlu0 %v3216_v40, %s2762_s12 }
 0x294   : > { %2338 = vst.msk [vmem:[%s3054_s7 + $0x5f] sm:$0x1] %vm1379_vm14, %v2320_v42 }
 0x295   : > { %v1489_v5 = vpop.permute.xlu0 %1488  ;;  %2194 = vrot.lane.b32.xlu1 %v2155_v51, %s2771_s5 }
 0x296   : > { %1510 = vst.msk [vmem:[%s3054_s7 + $0x23] sm:$0x1] %vm1379_vm14, %v1489_v5 }
 0x297   : > { %v1427_v50 = vpop.permute.xlu1 %1426  ;;  %1592 = vrot.lane.b32.xlu0 %v3216_v40, %s2763_s13 }
 0x298   : > { %1447 = vst.msk [vmem:[%s3054_s7 + $0x31] sm:$0x1] %vm1379_vm14, %v1427_v50 }
 0x299   : > { %v1493_v11 = vpop.permute.xlu0 %1492  ;;  %2198 = vrot.lane.b32.xlu1 %v2163_v56, %s2771_s5 }
 0x29a   : > { %1512 = vst.msk [vmem:[%s3054_s7 + $0x43] sm:$0x1] %vm1379_vm14, %v1493_v11 }
 0x29b   : > { %v1431_v51 = vpop.permute.xlu1 %1430  ;;  %1731 = vrot.lane.b32.xlu0 %v1674_v6, %s2765_s20 }
 0x29c   : > { %1449 = vst.msk [vmem:[%s3054_s7 + $0x51] sm:$0x1] %vm1379_vm14, %v1431_v51 }
 0x29d   : > { %v1521_v40 = vpop.permute.xlu0 %1520  ;;  %2031 = vrot.lane.b32.xlu1 %v3189_v30, %s2770_s29 }
 0x29e   : > { %1542 = vst.msk [vmem:[%s3054_s7 + $0x24] sm:$0x1] %vm1379_vm14, %v1521_v40 }
 0x29f   : > { %v1459_v56 = vpop.permute.xlu1 %1458  ;;  %1735 = vrot.lane.b32.xlu0 %v1682_v54, %s2765_s20 }
 0x2a0   : > { %1479 = vst.msk [vmem:[%s3054_s7 + $0x32] sm:$0x1] %vm1379_vm14, %v1459_v56 }
 0x2a1   : > { %v1525_v22 = vpop.permute.xlu0 %1524  ;;  %2035 = vrot.lane.b32.xlu1 %v3237_v55, %s2770_s29 }
 0x2a2   : > { %1544 = vst.msk [vmem:[%s3054_s7 + $0x44] sm:$0x1] %vm1379_vm14, %v1525_v22 }
 0x2a3   : > { %v1463_v30 = vpop.permute.xlu1 %1462  ;;  %1747 = vrot.lane.b32.xlu0 %v1706_v57, %s2765_s20 }
 0x2a4   : > { %1481 = vst.msk [vmem:[%s3054_s7 + $0x52] sm:$0x1] %vm1379_vm14, %v1463_v30 }
 0x2a5   : > { %v1553_v16 = vpop.permute.xlu0 %1552  ;;  %1434 = vrot.lane.b32.xlu1 %v3256_v12, %s2751_s8  ;;  %s2463_s8 = sshll.u32 %s2821_s19, 11  ;;  %s3904_s19 = scalar_lea.sflag [#allocation3], %s188_s30 }
 0x2a6   : > { %1574 = vst.msk [vmem:[%s3054_s7 + $0x25] sm:$0x1] %vm1379_vm14, %v1553_v16 }
 0x2a7   : > { %v1491_v6 = vpop.permute.xlu1 %1490  ;;  %1751 = vrot.lane.b32.xlu0 %v1714_v59, %s2765_s20 }
 0x2a8   : > { %1511 = vst.msk [vmem:[%s3054_s7 + $0x33] sm:$0x1] %vm1379_vm14, %v1491_v6 }
 0x2a9   : > { %v1557_v28 = vpop.permute.xlu0 %1556  ;;  %1466 = vrot.lane.b32.xlu1 %v3256_v12, %s2754_s11  ;;  %s2355_s11 = sshll.u32 %s3054_s7, 4  ;;  %s3896_s11 = int_to_ptr.vmem [resolvable:$true] %s2355_s11 }
 0x2aa   : > { %1576 = vst.msk [vmem:[%s3054_s7 + $0x45] sm:$0x1] %vm1379_vm14, %v1557_v28 }
 0x2ab   : > { %v1495_v54 = vpop.permute.xlu1 %1494  ;;  %1877 = vrot.lane.b32.xlu0 %v3267_v19, %s2764_s14 }
 0x2ac   : > { %1513 = vst.msk [vmem:[%s3054_s7 + $0x53] sm:$0x1] %vm1379_vm14, %v1495_v54 }
 0x2ad   : > { %v1585_v55 = vpop.permute.xlu0 %1584  ;;  %1498 = vrot.lane.b32.xlu1 %v3256_v12, %s2760_s9 }
 0x2ae   : > { %1606 = vst.msk [vmem:[%s3054_s7 + $0x26] sm:$0x1] %vm1379_vm14, %v1585_v55 }
 0x2af   : > { %v1523_v20 = vpop.permute.xlu1 %1522  ;;  %1909 = vrot.lane.b32.xlu0 %v3267_v19, %s2766_s22 }
 0x2b0   : > { %1543 = vst.msk [vmem:[%s3054_s7 + $0x34] sm:$0x1] %vm1379_vm14, %v1523_v20 }
 0x2b1   : > { %v1589_v57 = vpop.permute.xlu0 %1588  ;;  %1530 = vrot.lane.b32.xlu1 %v3256_v12, %s2761_s10  ;;  %s3894_s10 = scalar_lea.hbm %s3949_s4, %s2463_s8 }
 0x2b2   : > { %1608 = vst.msk [vmem:[%s3054_s7 + $0x46] sm:$0x1] %vm1379_vm14, %v1589_v57 }
 0x2b3   : > { %v1527_v59 = vpop.permute.xlu1 %1526  ;;  %1941 = vrot.lane.b32.xlu0 %v3267_v19, %s2767_s23 }
 0x2b4   : > { %1545 = vst.msk [vmem:[%s3054_s7 + $0x54] sm:$0x1] %vm1379_vm14, %v1527_v59 }
 0x2b5   : > { %v1728_v31 = vpop.permute.xlu0 %1727  ;;  %1562 = vrot.lane.b32.xlu1 %v3256_v12, %s2762_s12  ;;  %s2681_s12 = scalar_lea.vmem %s3896_s11, 2048 }
 0x2b6   : > { %v1760_v24 = vsel %vm1759_vm15, %v1728_v31, %v3471_v45  ;;  %p2682_p11 = scmp.ne.s32.totalorder %s3896_s11, %s2681_s12 }
 0x2b7   : > { %1776 = vst.msk [vmem:[%s3054_s7 + $0x7] sm:$0x1] %vm1379_vm14, %v1760_v24  ;;  %v1555_v13 = vpop.permute.xlu1 %1554  ;;  %1973 = vrot.lane.b32.xlu0 %v3267_v19, %s2768_s27 }
 0x2b8   : > { %1575 = vst.msk [vmem:[%s3054_s7 + $0x35] sm:$0x1] %vm1379_vm14, %v1555_v13  ;;  %p2683_p12 = pnand %p2682_p11, %p2838_p5 }
 0x2b9   : > { %v1744_v36 = vpop.permute.xlu0 %1743  ;;  %1594 = vrot.lane.b32.xlu1 %v3256_v12, %s2763_s13  ;;  %s2772_s13 = smov [#allocation2]  }
 0x2ba   : > { %v1764_v29 = vsel %vm1759_vm15, %v1744_v36, %v3479_v4  ;;  %p2684_p13 = pneg %p2683_p12 }
 0x2bb   : > { %1780 = vst.msk [vmem:[%s3054_s7 + $0x47] sm:$0x1] %vm1379_vm14, %v1764_v29  ;;  %v1559_v45 = vpop.permute.xlu1 %1558  ;;  %2005 = vrot.lane.b32.xlu0 %v3267_v19, %s2769_s28 }
 0x2bc   : > { %1577 = vst.msk [vmem:[%s3054_s7 + $0x55] sm:$0x1] %vm1379_vm14, %v1559_v45 }
 0x2bd   : > { %v1870_v52 = vpop.permute.xlu0 %1869  ;;  %1741 = vrot.lane.b32.xlu1 %v1694_v21, %s2765_s20 }
 0x2be   : > { %1891 = vst.msk [vmem:[%s3054_s7 + $0x28] sm:$0x1] %vm1379_vm14, %v1870_v52 }
 0x2bf   : > { %v1587_v12 = vpop.permute.xlu1 %1586  ;;  %2176 = vrot.lane.b32.xlu0 %v2119_v10, %s2771_s5 }
 0x2c0   : > { %1607 = vst.msk [vmem:[%s3054_s7 + $0x36] sm:$0x1] %vm1379_vm14, %v1587_v12 }
 0x2c1   : > { %v1874_v4 = vpop.permute.xlu0 %1873  ;;  %1757 = vrot.lane.b32.xlu1 %v3952_v23, %s2765_s20 }
 0x2c2   : > { %1893 = vst.msk [vmem:[%s3054_s7 + $0x48] sm:$0x1] %vm1379_vm14, %v1874_v4 }
 0x2c3   : > { %v1591_v21 = vpop.permute.xlu1 %1590  ;;  %2180 = vrot.lane.b32.xlu0 %v3953_v8, %s2771_s5 }
 0x2c4   : > { %1609 = vst.msk [vmem:[%s3054_s7 + $0x56] sm:$0x1] %vm1379_vm14, %v1591_v21 }
 0x2c5   : > { %v1902_v34 = vpop.permute.xlu0 %1901  ;;  %1879 = vrot.lane.b32.xlu1 %v3280_v39, %s2764_s14  ;;  %s2685_s14 = sshll.u32 %s2772_s13, 4  ;;  %s2686_s14 = int_to_ptr.vmem [resolvable:$false] %s2685_s14 }
 0x2c6   : > { %1923 = vst.msk [vmem:[%s3054_s7 + $0x29] sm:$0x1] %vm1379_vm14, %v1902_v34  ;;  %p2688_p0 = scmp.lt.s32.totalorder %s3896_s11, %s2686_s14 }
 0x2c7   : > { %v3695_v10 = vpop.permute.xlu1 %1733  ;;  %2192 = vrot.lane.b32.xlu0 %v3954_v53, %s2771_s5 }
 0x2c9   : > { %v1906_v48 = vpop.permute.xlu0 %1905  ;;  %1911 = vrot.lane.b32.xlu1 %v3280_v39, %s2766_s22 }
 0x2ca   : > { %1925 = vst.msk [vmem:[%s3054_s7 + $0x49] sm:$0x1] %vm1379_vm14, %v1906_v48 }
 0x2cb   : > { %v3705_v37 = vpop.permute.xlu1 %1737  ;;  %2196 = vrot.lane.b32.xlu0 %v3955_v3, %s2771_s5 }
 0x2cd   : > { %v1934_v63 = vpop.permute.xlu0 %1933  ;;  %1943 = vrot.lane.b32.xlu1 %v3280_v39, %s2767_s23 }
 0x2ce   : > { %1955 = vst.msk [vmem:[%s3054_s7 + $0x2a] sm:$0x1] %vm1379_vm14, %v1934_v63 }
 0x2cf   : > { %v3715_v38 = vpop.permute.xlu1 %1749  ;;  %2037 = vrot.lane.b32.xlu0 %v3267_v19, %s2770_s29 }
 0x2d1   : > { %v1938_v25 = vpop.permute.xlu0 %1937  ;;  %1975 = vrot.lane.b32.xlu1 %v3280_v39, %s2768_s27 }
 0x2d2   : > { %1957 = vst.msk [vmem:[%s3054_s7 + $0x4a] sm:$0x1] %vm1379_vm14, %v1938_v25 }
 0x2d3   : > { %v3723_v43 = vpop.permute.xlu1 %1753  ;;  %1739 = vrot.lane.b32.xlu0 %v3956_v46, %s2765_s20 }
 0x2d5   : > { %v1966_v2 = vpop.permute.xlu0 %1965  ;;  %2007 = vrot.lane.b32.xlu1 %v3280_v39, %s2769_s28 }
 0x2d6   : > { %1987 = vst.msk [vmem:[%s3054_s7 + $0x2b] sm:$0x1] %vm1379_vm14, %v1966_v2 }
 0x2d7   : > { %v1872_v19 = vpop.permute.xlu1 %1871  ;;  %1755 = vrot.lane.b32.xlu0 %v3957_v26, %s2765_s20  ;;  %s2687_s20 = scalar_lea.vmem %s2686_s14, 4096 }
 0x2d8   : > { %1892 = vst.msk [vmem:[%s3054_s7 + $0x38] sm:$0x1] %vm1379_vm14, %v1872_v19  ;;  %p2689_p1 = scmp.lt.s32.totalorder %s2687_s20, %s2681_s12 }
 0x2d9   : > { %v1970_v14 = vpop.permute.xlu0 %1969  ;;  %2186 = vrot.lane.b32.xlu1 %v2139_v58, %s2771_s5 }
 0x2da   : > { %1989 = vst.msk [vmem:[%s3054_s7 + $0x4b] sm:$0x1] %vm1379_vm14, %v1970_v14  ;;  %p2690_p2 = por %p2689_p1, %p2688_p0 }
 0x2db   : > { %v1876_v9 = vpop.permute.xlu1 %1875  ;;  %2184 = vrot.lane.b32.xlu0 %v2135_v15, %s2771_s5 }
 0x2dc   : > { %1894 = vst.msk [vmem:[%s3054_s7 + $0x58] sm:$0x1] %vm1379_vm14, %v1876_v9  ;;  %p2691_p3 = pnand %p2690_p2, %p2684_p13 }
 0x2dd   : > { %v1998_v44 = vpop.permute.xlu0 %1997  ;;  %2202 = vrot.lane.b32.xlu1 %v2171_v1, %s2771_s5 }
 0x2de   : > { %2019 = vst.msk [vmem:[%s3054_s7 + $0x2c] sm:$0x1] %vm1379_vm14, %v1998_v44 }
 0x2df   : > { %v1904_v58 = vpop.permute.xlu1 %1903  ;;  %2200 = vrot.lane.b32.xlu0 %v2167_v33, %s2771_s5 }
 0x2e0   : > { %1924 = vst.msk [vmem:[%s3054_s7 + $0x39] sm:$0x1] %vm1379_vm14, %v1904_v58 }
 0x2e1   : > { %v2002_v15 = vpop.permute.xlu0 %2001  ;;  %2039 = vrot.lane.b32.xlu1 %v3280_v39, %s2770_s29 }
 0x2e2   : > { %2021 = vst.msk [vmem:[%s3054_s7 + $0x4c] sm:$0x1] %vm1379_vm14, %v2002_v15 }
 0x2e3   : > { %v1908_v49 = vpop.permute.xlu1 %1907  ;;  %2321 = vrot.lane.b32.xlu0 %v3298_v41, %s2759_s6 }
 0x2e4   : > { %1926 = vst.msk [vmem:[%s3054_s7 + $0x59] sm:$0x1] %vm1379_vm14, %v1908_v49 }
 0x2e5   : > { %v2173_v18 = vpop.permute.xlu0 %2172  ;;  %2323 = vrot.lane.b32.xlu1 %v3304_v17, %s2759_s6 }
 0x2e6   : > { %v2204_v27 = vsel %vm229_vm3, %v2173_v18, %v3539_v35 }
 0x2e7   : > { %2220 = vst.msk [vmem:[%s3054_s7 + $0xe] sm:$0x1] %vm1379_vm14, %v2204_v27  ;;  %v1936_v32 = vpop.permute.xlu1 %1935 }
 0x2e8   : > { %1956 = vst.msk [vmem:[%s3054_s7 + $0x3a] sm:$0x1] %vm1379_vm14, %v1936_v32 }
 0x2e9   : > { %v2189_v33 = vpop.permute.xlu0 %2188 }
 0x2ea   : > { %v2208_v39 = vsel %vm229_vm3, %v2189_v33, %v3547_v62 }
 0x2eb   : > { %2224 = vst.msk [vmem:[%s3054_s7 + $0x4e] sm:$0x1] %vm1379_vm14, %v2208_v39  ;;  %v1940_v41 = vpop.permute.xlu1 %1939 }
 0x2ec   : > { %1958 = vst.msk [vmem:[%s3054_s7 + $0x5a] sm:$0x1] %vm1379_vm14, %v1940_v41 }
 0x2ed   : > { %v2030_v17 = vpop.permute.xlu0 %2029 }
 0x2ee   : > { %2051 = vst.msk [vmem:[%s3054_s7 + $0x2d] sm:$0x1] %vm1379_vm14, %v2030_v17 }
 0x2ef   : > { %v1968_v1 = vpop.permute.xlu1 %1967 }
 0x2f0   : > { %1988 = vst.msk [vmem:[%s3054_s7 + $0x3b] sm:$0x1] %vm1379_vm14, %v1968_v1 }
 0x2f1   : > { %v2034_v47 = vpop.permute.xlu0 %2033 }
 0x2f2   : > { %2053 = vst.msk [vmem:[%s3054_s7 + $0x4d] sm:$0x1] %vm1379_vm14, %v2034_v47 }
 0x2f3   : > { %v1972_v35 = vpop.permute.xlu1 %1971 }
 0x2f4   : > { %1990 = vst.msk [vmem:[%s3054_s7 + $0x5b] sm:$0x1] %vm1379_vm14, %v1972_v35 }
 0x2f5   : > { %v1433_v61 = vpop.permute.xlu0 %1432 }
 0x2f6   : > { %1450 = vst.msk [vmem:[%s3054_s7 + $0x61] sm:$0x1] %vm1379_vm14, %v1433_v61 }
 0x2f7   : > { %v2000_v62 = vpop.permute.xlu1 %1999 }
 0x2f8   : > { %2020 = vst.msk [vmem:[%s3054_s7 + $0x3c] sm:$0x1] %vm1379_vm14, %v2000_v62 }
 0x2f9   : > { %v1465_v0 = vpop.permute.xlu0 %1464 }
 0x2fa   : > { %1482 = vst.msk [vmem:[%s3054_s7 + $0x62] sm:$0x1] %vm1379_vm14, %v1465_v0 }
 0x2fb   : > { %v2004_v60 = vpop.permute.xlu1 %2003 }
 0x2fc   : > { %2022 = vst.msk [vmem:[%s3054_s7 + $0x5c] sm:$0x1] %vm1379_vm14, %v2004_v60 }
 0x2fd   : > { %v1497_v7 = vpop.permute.xlu0 %1496 }
 0x2fe   : > { %1514 = vst.msk [vmem:[%s3054_s7 + $0x63] sm:$0x1] %vm1379_vm14, %v1497_v7 }
 0x2ff   : > { %v2179_v42 = vpop.permute.xlu1 %2178 }
 0x301   : > { %v1529_v5 = vpop.permute.xlu0 %1528 }
 0x302   : > { %1546 = vst.msk [vmem:[%s3054_s7 + $0x64] sm:$0x1] %vm1379_vm14, %v1529_v5 }
 0x303   : > { %v2183_v50 = vpop.permute.xlu1 %2182 }
 0x305   : > { %v1561_v11 = vpop.permute.xlu0 %1560 }
 0x306   : > { %1578 = vst.msk [vmem:[%s3054_s7 + $0x65] sm:$0x1] %vm1379_vm14, %v1561_v11 }
 0x307   : > { %v2195_v51 = vpop.permute.xlu1 %2194 }
 0x309   : > { %v1593_v40 = vpop.permute.xlu0 %1592 }
 0x30a   : > { %1610 = vst.msk [vmem:[%s3054_s7 + $0x66] sm:$0x1] %vm1379_vm14, %v1593_v40 }
 0x30b   : > { %v2199_v56 = vpop.permute.xlu1 %2198 }
 0x30d   : > { %v1732_v22 = vpop.permute.xlu0 %1731 }
 0x30e   : > { %v1761_v30 = vsel %vm1759_vm15, %v1732_v22, %v3695_v10 }
 0x30f   : > { %1777 = vst.msk [vmem:[%s3054_s7 + $0x17] sm:$0x1] %vm1379_vm14, %v1761_v30  ;;  %v2032_v16 = vpop.permute.xlu1 %2031 }
 0x310   : > { %2052 = vst.msk [vmem:[%s3054_s7 + $0x3d] sm:$0x1] %vm1379_vm14, %v2032_v16 }
 0x311   : > { %v1736_v6 = vpop.permute.xlu0 %1735 }
 0x312   : > { %v1762_v28 = vsel %vm1759_vm15, %v1736_v6, %v3705_v37 }
 0x313   : > { %1778 = vst.msk [vmem:[%s3054_s7 + $0x27] sm:$0x1] %vm1379_vm14, %v1762_v28  ;;  %v2036_v54 = vpop.permute.xlu1 %2035 }
 0x314   : > { %2054 = vst.msk [vmem:[%s3054_s7 + $0x5d] sm:$0x1] %vm1379_vm14, %v2036_v54 }
 0x315   : > { %v1748_v55 = vpop.permute.xlu0 %1747 }
 0x316   : > { %v1765_v20 = vsel %vm1759_vm15, %v1748_v55, %v3715_v38 }
 0x317   : > { %1781 = vst.msk [vmem:[%s3054_s7 + $0x57] sm:$0x1] %vm1379_vm14, %v1765_v20  ;;  %v1435_v57 = vpop.permute.xlu1 %1434 }
 0x318   : > { %1451 = vst.msk [vmem:[%s3054_s7 + $0x71] sm:$0x1] %vm1379_vm14, %v1435_v57 }
 0x319   : > { %v1752_v59 = vpop.permute.xlu0 %1751 }
 0x31a   : > { %v1766_v31 = vsel %vm1759_vm15, %v1752_v59, %v3723_v43 }
 0x31b   : > { %1782 = vst.msk [vmem:[%s3054_s7 + $0x67] sm:$0x1] %vm1379_vm14, %v1766_v31  ;;  %v1467_v24 = vpop.permute.xlu1 %1466 }
 0x31c   : > { %1483 = vst.msk [vmem:[%s3054_s7 + $0x72] sm:$0x1] %vm1379_vm14, %v1467_v24 }
 0x31d   : > { %v1878_v13 = vpop.permute.xlu0 %1877 }
 0x31e   : > { %1895 = vst.msk [vmem:[%s3054_s7 + $0x68] sm:$0x1] %vm1379_vm14, %v1878_v13 }
 0x31f   : > { %v1499_v36 = vpop.permute.xlu1 %1498 }
 0x320   : > { %1515 = vst.msk [vmem:[%s3054_s7 + $0x73] sm:$0x1] %vm1379_vm14, %v1499_v36 }
 0x321   : > { %v1910_v29 = vpop.permute.xlu0 %1909 }
 0x322   : > { %1927 = vst.msk [vmem:[%s3054_s7 + $0x69] sm:$0x1] %vm1379_vm14, %v1910_v29 }
 0x323   : > { %v1531_v45 = vpop.permute.xlu1 %1530 }
 0x324   : > { %1547 = vst.msk [vmem:[%s3054_s7 + $0x74] sm:$0x1] %vm1379_vm14, %v1531_v45 }
 0x325   : > { %v1942_v52 = vpop.permute.xlu0 %1941 }
 0x326   : > { %1959 = vst.msk [vmem:[%s3054_s7 + $0x6a] sm:$0x1] %vm1379_vm14, %v1942_v52 }
 0x327   : > { %v1563_v12 = vpop.permute.xlu1 %1562 }
 0x328   : > { %1579 = vst.msk [vmem:[%s3054_s7 + $0x75] sm:$0x1] %vm1379_vm14, %v1563_v12 }
 0x329   : > { %v1974_v4 = vpop.permute.xlu0 %1973 }
 0x32a   : > { %1991 = vst.msk [vmem:[%s3054_s7 + $0x6b] sm:$0x1] %vm1379_vm14, %v1974_v4 }
 0x32b   : > { %v1595_v23 = vpop.permute.xlu1 %1594 }
 0x32c   : > { %1611 = vst.msk [vmem:[%s3054_s7 + $0x76] sm:$0x1] %vm1379_vm14, %v1595_v23 }
 0x32d   : > { %v2006_v21 = vpop.permute.xlu0 %2005 }
 0x32e   : > { %2023 = vst.msk [vmem:[%s3054_s7 + $0x6c] sm:$0x1] %vm1379_vm14, %v2006_v21 }
 0x32f   : > { %v1742_v8 = vpop.permute.xlu1 %1741 }
 0x331   : > { %v2177_v34 = vpop.permute.xlu0 %2176 }
 0x332   : > { %v2205_v10 = vsel %vm229_vm3, %v2177_v34, %v2179_v42 }
 0x333   : > { %2221 = vst.msk [vmem:[%s3054_s7 + $0x1e] sm:$0x1] %vm1379_vm14, %v2205_v10  ;;  %v1758_v53 = vpop.permute.xlu1 %1757 }
 0x335   : > { %v2181_v48 = vpop.permute.xlu0 %2180 }
 0x336   : > { %v2206_v37 = vsel %vm229_vm3, %v2181_v48, %v2183_v50 }
 0x337   : > { %2222 = vst.msk [vmem:[%s3054_s7 + $0x2e] sm:$0x1] %vm1379_vm14, %v2206_v37  ;;  %v1880_v3 = vpop.permute.xlu1 %1879 }
 0x338   : > { %1896 = vst.msk [vmem:[%s3054_s7 + $0x78] sm:$0x1] %vm1379_vm14, %v1880_v3 }
 0x339   : > { %v2193_v63 = vpop.permute.xlu0 %2192 }
 0x33a   : > { %v2209_v38 = vsel %vm229_vm3, %v2193_v63, %v2195_v51 }
 0x33b   : > { %2225 = vst.msk [vmem:[%s3054_s7 + $0x5e] sm:$0x1] %vm1379_vm14, %v2209_v38  ;;  %v1912_v25 = vpop.permute.xlu1 %1911 }
 0x33c   : > { %1928 = vst.msk [vmem:[%s3054_s7 + $0x79] sm:$0x1] %vm1379_vm14, %v1912_v25 }
 0x33d   : > { %v2197_v43 = vpop.permute.xlu0 %2196 }
 0x33e   : > { %v2210_v46 = vsel %vm229_vm3, %v2197_v43, %v2199_v56 }
 0x33f   : > { %2226 = vst.msk [vmem:[%s3054_s7 + $0x6e] sm:$0x1] %vm1379_vm14, %v2210_v46  ;;  %v1944_v2 = vpop.permute.xlu1 %1943 }
 0x340   : > { %1960 = vst.msk [vmem:[%s3054_s7 + $0x7a] sm:$0x1] %vm1379_vm14, %v1944_v2 }
 0x341   : > { %v2038_v19 = vpop.permute.xlu0 %2037 }
 0x342   : > { %2055 = vst.msk [vmem:[%s3054_s7 + $0x6d] sm:$0x1] %vm1379_vm14, %v2038_v19 }
 0x343   : > { %v1976_v26 = vpop.permute.xlu1 %1975 }
 0x344   : > { %1992 = vst.msk [vmem:[%s3054_s7 + $0x7b] sm:$0x1] %vm1379_vm14, %v1976_v26 }
 0x345   : > { %v1740_v14 = vpop.permute.xlu0 %1739 }
 0x346   : > { %v1763_v9 = vsel %vm1759_vm15, %v1740_v14, %v1742_v8 }
 0x347   : > { %1779 = vst.msk [vmem:[%s3054_s7 + $0x37] sm:$0x1] %vm1379_vm14, %v1763_v9  ;;  %v2008_v44 = vpop.permute.xlu1 %2007 }
 0x348   : > { %2024 = vst.msk [vmem:[%s3054_s7 + $0x7c] sm:$0x1] %vm1379_vm14, %v2008_v44 }
 0x349   : > { %v1756_v58 = vpop.permute.xlu0 %1755 }
 0x34a   : > { %v1767_v15 = vsel %vm1759_vm15, %v1756_v58, %v1758_v53 }
 0x34b   : > { %1783 = vst.msk [vmem:[%s3054_s7 + $0x77] sm:$0x1] %vm1379_vm14, %v1767_v15  ;;  %v2187_v49 = vpop.permute.xlu1 %2186 }
 0x34d   : > { %v2185_v18 = vpop.permute.xlu0 %2184 }
 0x34e   : > { %v2207_v27 = vsel %vm229_vm3, %v2185_v18, %v2187_v49 }
 0x34f   : > { %2223 = vst.msk [vmem:[%s3054_s7 + $0x3e] sm:$0x1] %vm1379_vm14, %v2207_v27  ;;  %v2203_v32 = vpop.permute.xlu1 %2202 }
 0x351   : > { %v2201_v33 = vpop.permute.xlu0 %2200 }
 0x352   : > { %v2211_v39 = vsel %vm229_vm3, %v2201_v33, %v2203_v32 }
 0x353   : > { %2227 = vst.msk [vmem:[%s3054_s7 + $0x7e] sm:$0x1] %vm1379_vm14, %v2211_v39  ;;  %v2040_v41 = vpop.permute.xlu1 %2039 }
 0x354   : > { %2056 = vst.msk [vmem:[%s3054_s7 + $0x7d] sm:$0x1] %vm1379_vm14, %v2040_v41 }
 0x355   : > { %v2322_v17 = vpop.permute.xlu0 %2321 }
 0x356   : > { %2339 = vst.msk [vmem:[%s3054_s7 + $0x6f] sm:$0x1] %vm1379_vm14, %v2322_v17 }
 0x357   : > { %v2324_v1 = vpop.permute.xlu1 %2323 }
 0x358   : > { %2340 = vst.msk [vmem:[%s3054_s7 + $0x7f] sm:$0x1] %vm1379_vm14, %v2324_v1 }
 0x359   : > { %2694 = shalt.err (!%p2691_p3)
}
 0x35a   : > { %s2695_s30 = scalar_lea.hbm %s3894_s10, 2048  ;;  %s2699_s23 = scalar_lea.hbm %s3949_s4, 4096 }
 0x35b   : > { %p2696_p4 = scmp.ne.s32.totalorder %s3894_s10, %s2695_s30  ;;  %p2700_p9 = scmp.lt.u32.totalorder %s3894_s10, %s3949_s4 }
 0x35c   : > { %p2701_p10 = scmp.lt.u32.totalorder %s2699_s23, %s2695_s30  ;;  %p2703_p12 = scmp.lt.u32.totalorder %s2695_s30, %s3894_s10 }
 0x35d   : > { %p2697_p7 = pnand %p2696_p4, %p2838_p5 }
 0x35e   : > { %p2702_p11 = por %p2701_p10, %p2700_p9 }
 0x35f   : > { %p2698_p8 = pneg %p2697_p7 }
 0x360   : > { %p2704_p13 = por %p2703_p12, %p2702_p11 }
 0x362   : > { %p2705_p0 = pnand %p2704_p13, %p2698_p8 }
 0x364   : > { %2708 = shalt.err (!%p2705_p0)
}
 0x365   : > { %s2773_s29 = smov 128   ;;  %s2774_s5 = smov 8  }
 0x366   : > { %2601 = dma.vmem_to_hbm [thread:$0]  (%p2838_p5), %s3896_s11, 2048, %s3894_s10, %s3904_s19, %s2773_s29, %s2773_s29, %s2774_s5  }
 0x367 PF: > { %p2607_p1 = scmp.ge.s32.totalorder %s2743_s18, 2  ;;  %s2370_s8 = sand.u32 1, %s2731_s15  }
 0x368   : > { %s2371_s6 = scalar_lea.sflag [#allocation3], %s2370_s8 }
 0x369   : > { %p2604_p2 = pnand %p2607_p1, %p2842_p6 }
 0x36b   : > { %2726 = dma.done.wait (!%p2604_p2), %s2371_s6, 2048  }
 0x36c   : > { %2728 = vsyncadd (!%p2604_p2), %s2371_s6, 4294965248  ;;  %p14_p3 = scmp.ge.s32.totalorder %s2825_s21, 4   ;;  %s3958_s15 = smov %s2735_s16 }
 0x36d   : > { %s3959_s16 = smov %s2739_s17  ;;  %s3960_s17 = smov %s2836_s24 }
 0x36e   : > { %s3961_s18 = smov %s2825_s21  ;;  %16 = sbr.rel (!%p14_p3) target bundleno = 3 (0x3), region = 79 }
 0x375   :  { %2376 = vsyncpa [#allocation3], 1 }
 0x376   :  { %2378 = vsyncpa [#allocation3 + $0x1], 1 }

</bundles_post_ra>
